<compile_context>
chip_gen: v5e
topology: v5e:2x2
jax: 0.10.0
libtpu: 0.0.40
codegen_flags: <defaults>
</compile_context>

<pallas_src>
import jax
import jax.numpy as jnp
from jax.experimental import pallas as pl
from jax.experimental.pallas import tpu as pltpu


def _round_up(x, m):
    return ((x + m - 1) // m) * m


def _choose_block_b(B, S, H, x_itemsize, target_bytes=4 << 20):
    """Pick a batch tile that moves ~target_bytes of token embeddings per step."""
    if B <= 8:
        return B
    rows = max(8, ((target_bytes // max(1, S * H * x_itemsize)) // 8) * 8)
    # Keep at least 2 grid steps so the "parallel" axis can be split across the
    # 2 TensorCores on v7x.
    rows = min(rows, max(8, _round_up(pl.cdiv(B, 2), 8)))
    rows = min(rows, (B // 8) * 8)
    return int(rows)


def _sentence_embed_kernel(x_ref, mask_ref, w_ref, b_ref, out_ref):
    """One batch tile.

    x:    [TB, S, H]  token embeddings (bf16 or f32; upcast to f32 here)
    mask: [TB, S]     f32, already scaled by 1/token_count (masked-mean weights)
    w:    [H, Dp]     bf16 projection weight (Dp lane-padded; pad cols are zero)
    b:    [1, Dp]     f32 projection bias (pad lanes are zero)
    out:  [TB, Dp]    L2-normalized pooled sentence embedding (f32)
    """
    # f32 upcast is mandatory on v5e (no bf16 VPU); accumulation is f32 on all.
    x = x_ref[...].astype(jnp.float32)                         # [TB, S, H]
    m = mask_ref[...]                                          # [TB, S]

    # Masked mean pooling over S BEFORE the projection (linear => commutes).
    # 1/len is already folded into the mask, so this sum IS the mean.
    # (If block_b*S*H ever grows enough to spill, chunk this reduction over S
    #  with lax.fori_loop(..., unroll=True) instead of one big product.)
    pooled = jnp.sum(x * m[:, :, None], axis=1)                # [TB, H] f32

    # Dense projection: bf16 operands on the MXU, f32 accumulation; bias added
    # once per pooled row.
    h = jnp.dot(pooled.astype(w_ref.dtype), w_ref[...],
                preferred_element_type=jnp.float32) + b_ref[...]   # [TB, Dp]

    # L2 normalization. Padded D lanes are exactly zero (zero w cols / bias),
    # so they do not perturb the sum of squares.
    sq = jnp.sum(h * h, axis=-1, keepdims=True)                # [TB, 1]
    out_ref[...] = (h * jax.lax.rsqrt(sq + 1e-12)).astype(out_ref.dtype)


def text_embed(token_embeds, attn_mask, w, b, *, block_b=None,
               vmem_limit_bytes=None):
    """token_embeds: [B,S,H] (bf16 preferred), attn_mask: [B,S], w: [H,D],
    b: [D] -> [B,D] f32 L2-normalized sentence embeddings."""
    B, S, H = token_embeds.shape
    D = w.shape[1]

    # Lane-dense output: pad D to a multiple of 128 with zero columns / bias.
    # TODO(synk): for real encoders H >= 384 so x is lane-dense; at toy H < 128
    #             the (S,H) layout wastes lanes — could fold (S,H) if it mattered.
    Dp = _round_up(D, 128)

    x_itemsize = jnp.dtype(token_embeds.dtype).itemsize
    if block_b is None:
        block_b = _choose_block_b(B, S, H, x_itemsize)
    if B <= 8:
        block_b = B                      # block dim == full dim, always legal
    else:
        block_b = max(8, min((int(block_b) // 8) * 8, (B // 8) * 8))
    grid_b = pl.cdiv(B, block_b)

    # Tiny host-side prep (no copy of the dominant [B,S,H] tensor):
    #  * fold 1/token_count into the mask (exact division, removes in-kernel
    #    mask reduction),
    #  * bf16 weights for the MXU, zero-padded D columns / bias lanes.
    am = attn_mask.astype(jnp.float32)
    counts = jnp.maximum(jnp.sum(am, axis=1, keepdims=True), 1.0)
    mean_mask = am / counts                                        # [B, S] f32
    w_p = jnp.zeros((H, Dp), jnp.bfloat16).at[:, :D].set(w.astype(jnp.bfloat16))
    b_p = jnp.zeros((1, Dp), jnp.float32).at[0, :D].set(b.astype(jnp.float32))

    # Explicit VMEM budget: double-buffered x/mask/out + resident weights,
    # capped at 48 MiB so it also fits v7x's 64 MiB physical VMEM (v5e/v6e have
    # 128 MiB, so the cap is safe everywhere).
    if vmem_limit_bytes is None:
        x_buf = block_b * S * H * x_itemsize
        m_buf = block_b * S * 4
        o_buf = block_b * Dp * 4
        wb_buf = H * Dp * 2 + Dp * 4
        needed = 2 * (x_buf + m_buf + o_buf) + 2 * wb_buf + (4 << 20)
        vmem_limit_bytes = int(min(max(needed, 32 << 20), 48 << 20))

    def _build(single_buffer_weights):
        if single_buffer_weights:
            # Constant index_map => weights stay resident; single-buffer them
            # so no dead second copy eats VMEM (matters most on v7x).
            w_spec = pl.BlockSpec((H, Dp), lambda i: (0, 0),
                                  pipeline_mode=pl.Buffered(1))
            b_spec = pl.BlockSpec((1, Dp), lambda i: (0, 0),
                                  pipeline_mode=pl.Buffered(1))
        else:
            w_spec = pl.BlockSpec((H, Dp), lambda i: (0, 0))
            b_spec = pl.BlockSpec((1, Dp), lambda i: (0, 0))
        return pl.pallas_call(
            _sentence_embed_kernel,
            out_shape=jax.ShapeDtypeStruct((B, Dp), jnp.float32),
            grid=(grid_b,),
            in_specs=[
                pl.BlockSpec((block_b, S, H), lambda i: (i, 0, 0)),  # pipelined
                pl.BlockSpec((block_b, S), lambda i: (i, 0)),        # pipelined
                w_spec,                                              # resident
                b_spec,                                              # resident
            ],
            out_specs=pl.BlockSpec((block_b, Dp), lambda i: (i, 0)),
            compiler_params=pltpu.CompilerParams(
                # Batch tiles are independent: shard across TensorCores and let
                # Pallas double-buffer x/mask against compute.
                dimension_semantics=("parallel",),
                vmem_limit_bytes=vmem_limit_bytes),
        )

    try:
        out = _build(True)(token_embeds, mean_mask, w_p, b_p)
    except Exception:
        # Graceful fallback if this jax version rejects pipeline_mode on a
        # grid BlockSpec; everything else (tiling, dtypes, vmem) is identical.
        out = _build(False)(token_embeds, mean_mask, w_p, b_p)

    # Only rows [:B] / cols [:D] are meaningful (boundary-block rows, if any,
    # are garbage by construction and dropped here).
    return out[:B, :D]


if __name__ == "__main__":
    # Small shapes consistent with a sentence-embedding forward pass.
    B, S, H, D, V = 64, 8, 32, 32, 64

    key = jax.random.PRNGKey(0)
    k_emb, k_w, k_b, k_ids, k_len = jax.random.split(key, 5)

    # Deterministic synthetic parameters (stand-in for pretrained weights).
    # Embedding table kept in bf16 so token embeddings stream as bf16.
    emb_table = (jax.random.normal(k_emb, (V, H), jnp.float32) * 0.02
                 ).astype(jnp.bfloat16)
    w = jax.random.normal(k_w, (H, D), dtype=jnp.float32) * 0.05
    b = jax.random.normal(k_b, (D,), dtype=jnp.float32) * 0.01

    # "Tokenized text": token ids + per-sentence lengths -> attention mask.
    token_ids = jax.random.randint(k_ids, (B, S), 0, V, dtype=jnp.int32)
    lengths = jax.random.randint(k_len, (B,), 1, S + 1, dtype=jnp.int32)
    attn_mask = (jnp.arange(S)[None, :] < lengths[:, None]).astype(jnp.float32)

    # Embedding lookup (gather) is glue outside the kernel.
    token_embeds = jnp.take(emb_table, token_ids, axis=0)   # [B, S, H] bf16

    out = jax.block_until_ready(text_embed(token_embeds, attn_mask, w, b))

    # Pure-JAX f32 reference with the original project-then-pool ordering
    # (commutes with the kernel's pool-then-project).
    x32 = token_embeds.astype(jnp.float32)
    h_ref = jnp.einsum("bsh,hd->bsd", x32, w) + b[None, None, :]
    counts = jnp.maximum(attn_mask.sum(axis=1, keepdims=True), 1.0)
    pooled_ref = (h_ref * attn_mask[:, :, None]).sum(axis=1) / counts
    ref = pooled_ref / jnp.linalg.norm(pooled_ref, axis=-1, keepdims=True)

    assert out.shape == (B, D)
    assert bool(jnp.all(jnp.isfinite(out)))
    norms = jnp.sqrt(jnp.sum(out * out, axis=-1))
    assert bool(jnp.all(jnp.abs(norms - 1.0) < 1e-3))
    assert bool(jnp.allclose(out, ref, atol=5e-3, rtol=5e-3))

    print("KERNEL_OK")
</pallas_src>

<mosaic_0001>
module attributes {stable_mosaic.version = 11 : i64} {
  func.func @_sentence_embed_kernel(%arg0: i32, %arg1: memref<32x8x32xbf16, #tpu.memory_space<vmem>>, %arg2: memref<32x8xf32, #tpu.memory_space<vmem>>, %arg3: memref<32x128xbf16, #tpu.memory_space<vmem>>, %arg4: memref<1x128xf32, #tpu.memory_space<vmem>>, %arg5: memref<32x128xf32, #tpu.memory_space<vmem>>) attributes {dimension_semantics = [#tpu.dimension_semantics<parallel>], iteration_bounds = array<i64: 2>, scalar_prefetch = 0 : i64, scratch_operands = 0 : i64, tpu.core_type = #tpu.core_type<tc>, window_params = [{transform_indices = @transform_0, window_bounds = array<i64: 32, 8, 32>}, {transform_indices = @transform_1, window_bounds = array<i64: 32, 8>}, {pipeline_mode = #tpu.pipeline_mode<synchronous>, transform_indices = @transform_2, window_bounds = array<i64: 32, 128>}, {pipeline_mode = #tpu.pipeline_mode<synchronous>, transform_indices = @transform_3, window_bounds = array<i64: 1, 128>}, {transform_indices = @transform_4, window_bounds = array<i64: 32, 128>}]} {
    %c0 = arith.constant 0 : index
    %c0_0 = arith.constant 0 : index
    %c0_1 = arith.constant 0 : index
    %0 = vector.load %arg1[%c0, %c0_0, %c0_1] : memref<32x8x32xbf16, #tpu.memory_space<vmem>>, vector<32x8x32xbf16>
    %1 = arith.extf %0 : vector<32x8x32xbf16> to vector<32x8x32xf32>
    %c0_2 = arith.constant 0 : index
    %c0_3 = arith.constant 0 : index
    %2 = vector.load %arg2[%c0_2, %c0_3] : memref<32x8xf32, #tpu.memory_space<vmem>>, vector<32x8xf32>
    %3 = vector.shape_cast %2 : vector<32x8xf32> to vector<32x8x1xf32>
    %4 = vector.broadcast %3 : vector<32x8x1xf32> to vector<32x8x32xf32>
    %5 = arith.mulf %1, %4 : vector<32x8x32xf32>
    %cst = arith.constant dense<0.000000e+00> : vector<32x32xf32>
    %6 = vector.multi_reduction <add>, %5, %cst [1] : vector<32x8x32xf32> to vector<32x32xf32>
    %7 = arith.truncf %6 : vector<32x32xf32> to vector<32x32xbf16>
    %c0_4 = arith.constant 0 : index
    %c0_5 = arith.constant 0 : index
    %8 = vector.load %arg3[%c0_4, %c0_5] : memref<32x128xbf16, #tpu.memory_space<vmem>>, vector<32x128xbf16>
    %cst_6 = arith.constant dense<0.000000e+00> : vector<32x128xf32>
    %9 = tpu.matmul %7, %8, %cst_6 {dimension_numbers = #tpu.dot_dimension_numbers<[1], [0], [0], [1], [0, 0, 1, 1], [], []>} : vector<32x32xbf16>, vector<32x128xbf16>, vector<32x128xf32> -> vector<32x128xf32>
    %c0_7 = arith.constant 0 : index
    %c0_8 = arith.constant 0 : index
    %10 = vector.load %arg4[%c0_7, %c0_8] : memref<1x128xf32, #tpu.memory_space<vmem>>, vector<1x128xf32>
    %11 = vector.broadcast %10 : vector<1x128xf32> to vector<32x128xf32>
    %12 = arith.addf %9, %11 : vector<32x128xf32>
    %13 = arith.mulf %12, %12 : vector<32x128xf32>
    %cst_9 = arith.constant dense<0.000000e+00> : vector<32xf32>
    %14 = vector.multi_reduction <add>, %13, %cst_9 [1] : vector<32x128xf32> to vector<32xf32>
    %15 = vector.shape_cast %14 : vector<32xf32> to vector<32x1xf32>
    %cst_10 = arith.constant 9.99999996E-13 : f32
    %16 = vector.broadcast %cst_10 : f32 to vector<32x1xf32>
    %17 = arith.addf %15, %16 : vector<32x1xf32>
    %18 = math.rsqrt %17 : vector<32x1xf32>
    %19 = vector.broadcast %18 : vector<32x1xf32> to vector<32x128xf32>
    %20 = arith.mulf %12, %19 : vector<32x128xf32>
    %c0_11 = arith.constant 0 : index
    %c0_12 = arith.constant 0 : index
    %21 = vector.load %arg5[%c0_11, %c0_12] : memref<32x128xf32, #tpu.memory_space<vmem>>, vector<32x128xf32>
    tpu.vector_store %arg5[%c0_11, %c0_12], %20 {strides = array<i32>} : memref<32x128xf32, #tpu.memory_space<vmem>>, vector<32x128xf32>,
    return
  }
  func.func @transform_0(%arg0: i32) -> (i32, i32, i32) {
    %c0_i32 = arith.constant 0 : i32
    %c0_i32_0 = arith.constant 0 : i32
    %c0_i32_1 = arith.constant 0 : i32
    return %arg0, %c0_i32, %c0_i32_0 : i32, i32, i32
  }
  func.func @transform_1(%arg0: i32) -> (i32, i32) {
    %c0_i32 = arith.constant 0 : i32
    %c0_i32_0 = arith.constant 0 : i32
    return %arg0, %c0_i32 : i32, i32
  }
  func.func @transform_2(%arg0: i32) -> (i32, i32) {
    %c0_i32 = arith.constant 0 : i32
    %c0_i32_0 = arith.constant 0 : i32
    %c0_i32_1 = arith.constant 0 : i32
    return %c0_i32, %c0_i32_0 : i32, i32
  }
  func.func @transform_3(%arg0: i32) -> (i32, i32) {
    %c0_i32 = arith.constant 0 : i32
    %c0_i32_0 = arith.constant 0 : i32
    %c0_i32_1 = arith.constant 0 : i32
    return %c0_i32, %c0_i32_0 : i32, i32
  }
  func.func @transform_4(%arg0: i32) -> (i32, i32) {
    %c0_i32 = arith.constant 0 : i32
    %c0_i32_0 = arith.constant 0 : i32
    return %arg0, %c0_i32 : i32, i32
  }
}

module attributes {stable_mosaic.version = 11 : i64} {
  func.func @_sentence_embed_kernel(%arg0: i32, %arg1: memref<32x8x32xbf16, #tpu.memory_space<vmem>>, %arg2: memref<32x8xf32, #tpu.memory_space<vmem>>, %arg3: memref<32x128xbf16, #tpu.memory_space<vmem>>, %arg4: memref<1x128xf32, #tpu.memory_space<vmem>>, %arg5: memref<32x128xf32, #tpu.memory_space<vmem>>) attributes {dimension_semantics = [#tpu.dimension_semantics<parallel>], iteration_bounds = array<i64: 2>, scalar_prefetch = 0 : i64, scratch_operands = 0 : i64, tpu.core_type = #tpu.core_type<tc>, window_params = [{transform_indices = @transform_0, window_bounds = array<i64: 32, 8, 32>}, {transform_indices = @transform_1, window_bounds = array<i64: 32, 8>}, {pipeline_mode = #tpu.pipeline_mode<synchronous>, transform_indices = @transform_2, window_bounds = array<i64: 32, 128>}, {pipeline_mode = #tpu.pipeline_mode<synchronous>, transform_indices = @transform_3, window_bounds = array<i64: 1, 128>}, {transform_indices = @transform_4, window_bounds = array<i64: 32, 128>}]} {
    %c0 = arith.constant 0 : index
    %c0_0 = arith.constant 0 : index
    %c0_1 = arith.constant 0 : index
    %0 = vector.load %arg1[%c0, %c0_0, %c0_1] : memref<32x8x32xbf16, #tpu.memory_space<vmem>>, vector<32x8x32xbf16>
    %1 = arith.extf %0 : vector<32x8x32xbf16> to vector<32x8x32xf32>
    %c0_2 = arith.constant 0 : index
    %c0_3 = arith.constant 0 : index
    %2 = vector.load %arg2[%c0_2, %c0_3] : memref<32x8xf32, #tpu.memory_space<vmem>>, vector<32x8xf32>
    %3 = vector.shape_cast %2 : vector<32x8xf32> to vector<32x8x1xf32>
    %4 = vector.broadcast %3 : vector<32x8x1xf32> to vector<32x8x32xf32>
    %5 = arith.mulf %1, %4 : vector<32x8x32xf32>
    %cst = arith.constant dense<0.000000e+00> : vector<32x32xf32>
    %6 = vector.multi_reduction <add>, %5, %cst [1] : vector<32x8x32xf32> to vector<32x32xf32>
    %7 = arith.truncf %6 : vector<32x32xf32> to vector<32x32xbf16>
    %c0_4 = arith.constant 0 : index
    %c0_5 = arith.constant 0 : index
    %8 = vector.load %arg3[%c0_4, %c0_5] : memref<32x128xbf16, #tpu.memory_space<vmem>>, vector<32x128xbf16>
    %cst_6 = arith.constant dense<0.000000e+00> : vector<32x128xf32>
    %9 = tpu.matmul %7, %8, %cst_6 {dimension_numbers = #tpu.dot_dimension_numbers<[1], [0], [0], [1], [0, 0, 1, 1], [], []>} : vector<32x32xbf16>, vector<32x128xbf16>, vector<32x128xf32> -> vector<32x128xf32>
    %c0_7 = arith.constant 0 : index
    %c0_8 = arith.constant 0 : index
    %10 = vector.load %arg4[%c0_7, %c0_8] : memref<1x128xf32, #tpu.memory_space<vmem>>, vector<1x128xf32>
    %11 = vector.broadcast %10 : vector<1x128xf32> to vector<32x128xf32>
    %12 = arith.addf %9, %11 : vector<32x128xf32>
    %13 = arith.mulf %12, %12 : vector<32x128xf32>
    %cst_9 = arith.constant dense<0.000000e+00> : vector<32xf32>
    %14 = vector.multi_reduction <add>, %13, %cst_9 [1] : vector<32x128xf32> to vector<32xf32>
    %15 = vector.shape_cast %14 : vector<32xf32> to vector<32x1xf32>
    %cst_10 = arith.constant 9.99999996E-13 : f32
    %16 = vector.broadcast %cst_10 : f32 to vector<32x1xf32>
    %17 = arith.addf %15, %16 : vector<32x1xf32>
    %18 = math.rsqrt %17 : vector<32x1xf32>
    %19 = vector.broadcast %18 : vector<32x1xf32> to vector<32x128xf32>
    %20 = arith.mulf %12, %19 : vector<32x128xf32>
    %c0_11 = arith.constant 0 : index
    %c0_12 = arith.constant 0 : index
    %21 = vector.load %arg5[%c0_11, %c0_12] : memref<32x128xf32, #tpu.memory_space<vmem>>, vector<32x128xf32>
    tpu.vector_store %arg5[%c0_11, %c0_12], %20 {strides = array<i32>} : memref<32x128xf32, #tpu.memory_space<vmem>>, vector<32x128xf32>,
    return
  }
  func.func @transform_0(%arg0: i32) -> (i32, i32, i32) {
    %c0_i32 = arith.constant 0 : i32
    %c0_i32_0 = arith.constant 0 : i32
    %c0_i32_1 = arith.constant 0 : i32
    return %arg0, %c0_i32, %c0_i32_0 : i32, i32, i32
  }
  func.func @transform_1(%arg0: i32) -> (i32, i32) {
    %c0_i32 = arith.constant 0 : i32
    %c0_i32_0 = arith.constant 0 : i32
    return %arg0, %c0_i32 : i32, i32
  }
  func.func @transform_2(%arg0: i32) -> (i32, i32) {
    %c0_i32 = arith.constant 0 : i32
    %c0_i32_0 = arith.constant 0 : i32
    %c0_i32_1 = arith.constant 0 : i32
    return %c0_i32, %c0_i32_0 : i32, i32
  }
  func.func @transform_3(%arg0: i32) -> (i32, i32) {
    %c0_i32 = arith.constant 0 : i32
    %c0_i32_0 = arith.constant 0 : i32
    %c0_i32_1 = arith.constant 0 : i32
    return %c0_i32, %c0_i32_0 : i32, i32
  }
  func.func @transform_4(%arg0: i32) -> (i32, i32) {
    %c0_i32 = arith.constant 0 : i32
    %c0_i32_0 = arith.constant 0 : i32
    return %arg0, %c0_i32 : i32, i32
  }
}

</mosaic_0001>

<bundles_post_ra>
// kernel: tpu_custom_call.1
= control target key start
LH: loop header
LB: loop body
LE: loop exit
PB: predicated region body
PF: predicated region fallthrough
CT: control target
= control target key end

     0   :  { %9 = vsyncpa [#allocation3], 0  ;;  %s1657_s0 = inlined_call_operand.vmem [shape: bf16[64,8,32], index: 0, kind: input, shape index: {}]   ;;  %s1658_s1 = inlined_call_operand.vmem [shape: f32[64,8], index: 1, kind: input, shape index: {}]   ;;  %s1659_s2 = inlined_call_operand.vmem [shape: bf16[32,128], index: 2, kind: input, shape index: {}]   ;;  %s1660_s3 = inlined_call_operand.vmem [shape: f32[1,128], index: 3, kind: input, shape index: {}]   ;;  %s1661_s4 = inlined_call_operand.hbm [shape: f32[64,128], index: 4, kind: output, shape index: {}]  }
   0x1   :  { %11 = vsyncpa [#allocation3 + $0x1], 0  ;;  %s1355_s15 = smov 0   ;;  %s1357_s16 = smov 0  }
   0x2   :  { %s1359_s17 = smov 0   ;;  %s1361_s18 = smov 0  }
   0x3 LB: > { %s1376_s19 = sadd.s32 4294967295, %s1326_s18   ;;  %s1103_s20 = sadd.s32 4294967294, %s1326_s18   ;;  %s1326_s18 = sphi %s1361_s18, %s1667_s18   ;;  %s1322_s17 = sphi %s1359_s17, %s1666_s17   ;;  %s1318_s16 = sphi %s1357_s16, %s1665_s16   ;;  %s1314_s15 = sphi %s1355_s15, %s1664_s15  }
   0x4   : > { %s1380_s21 = sadd.s32 1, %s1326_s18   ;;  %s118_s22 = sadd.s32 1, %s1322_s17 }
   0x5   : > { %s115_s23 = ssub.s32 %s1326_s18, %s1380_s21  ;;  %p128_p0 = scmp.ne.s32.totalorder %s1322_s17, %s1318_s16 }
   0x6   : > { %p116_p1 = scmp.eq.s32.totalorder %s115_s23, 0  ;;  %p129_p2 = scmp.eq.s32.totalorder %s1376_s19, 1 }
   0x7   : > { %p134_p3 = scmp.ne.s32.totalorder %s1318_s16, %s1314_s15  ;;  %p135_p4 = scmp.eq.s32.totalorder %s1103_s20, 1 }
   0x8   : > { %s1391_s24 = scalar_select %p116_p1, %s1322_s17, %s118_s22  }
   0x9   : > { %p1393_p5 = por %p129_p2, %p128_p0  ;;  %p1397_p6 = por %p135_p4, %p134_p3 }
   0xa   : > { %p1106_p7 = scmp.ge.s32.totalorder %s1326_s18, 1  ;;  %p177_p8 = scmp.lt.s32.totalorder %s1326_s18, 3 }
   0xc   : > { %p178_p9 = pnand %p1106_p7, %p177_p8 }
   0xd   : > { %s1110_s27 = sshll.u32 (!%p178_p9), %s1376_s19, 2  ;;  %s1417_s6 = sshll.u32 (!%p178_p9), %s1376_s19, 5 }
   0xe   : > { %181 = sbr.rel (%p178_p9) target bundleno = 529 (0x211), region = 36  ;;  %p215_p10 = scmp.lt.s32.totalorder (!%p178_p9), %s1110_s27, 7 }
   0xf   : > { %p209_p11 = scmp.lt.s32.totalorder (!%p178_p9), %s1417_s6, 63  ;;  %s205_s23 = sand.u32 (!%p178_p9), 1, %s1318_s16  }
  0x10   : > { %s1284_s13 = scalar_lea.hbm (!%p178_p9), %s1661_s4, 64 }
  0x13   : > { %v291_v0 = vlaneseq  ;;  %s1669_s27 = smov (!%p215_p10, %s1110_s27), 7  ;;  %vm546_vm0 = vcmask 261120   ;;  %vm875_vm1 = vcmask 1041409   ;;  %vm877_vm2 = vcmask 1042434  }
  0x14   : > { %s1111_s28 = sshll.u32 %s1669_s27, 3  ;;  %vm879_vm3 = vcmask 1043459   ;;  %vm881_vm4 = vcmask 1044484   ;;  %vm883_vm5 = vcmask 1045509   ;;  %vm885_vm6 = vcmask 1046534   ;;  %s1107_s27 = sshll.u32 %s205_s23, 5 }
  0x15   : > { %v292_v1 = vshrl.u32 %v291_v0, 7  ;;  %s218_s5 = scalar_lea.vmem %s1658_s1, %s1111_s28  ;;  %vm887_vm7 = vcmask 1047559   ;;  %s1613_s28 = scalar_lea.vmem [#allocation2], %s1107_s27 }
  0x16   : > { %v1407_v2 = vld [vmem:[%s218_s5 + $0x10] sm:$0xff]  ;;  %v287_v3 = vld [vmem:[%s218_s5 + $0x8] sm:$0xff]  ;;  %v286_v4 = vld [vmem:[%s218_s5] sm:$0xff]  ;;  %s210_s7 = scalar_select %p209_p11, %s1417_s6, 63 }
  0x17   : > { %1254 = vset.pattern.permute.xlu2 %v292_v1  ;;  %1253 = vset.pattern.permute.xlu1 %v292_v1  ;;  %v402_v5 = vperm.slane %v1407_v2, 0  ;;  %v346_v6 = vperm.slane %v287_v3, 0  ;;  %v290_v7 = vperm.slane %v286_v4, 0  ;;  %v409_v8 = vperm.slane %v1407_v2, 1  ;;  %v289_v11 = vld [vmem:[%s218_s5 + $0x18] sm:$0xff]  ;;  %s1025_s5 = scalar_lea.hbm %s1661_s4, %s1417_s6  ;;  %s1014_s6 = scalar_lea.sflag [#allocation3], %s205_s23 }
  0x18   : > { %1252 = vset.pattern.permute.xlu0 %v292_v1  ;;  %v353_v9 = vperm.slane %v287_v3, 1  ;;  %v297_v10 = vperm.slane %v286_v4, 1  ;;  %v465_v12 = vperm.slane %v289_v11, 1  ;;  %v304_v13 = vperm.slane %v286_v4, 2  ;;  %s1109_s8 = sshll.u32 %s210_s7, 2  ;;  %s1026_s7 = sshll.u32 %s1613_s28, 4  ;;  %s1027_s7 = int_to_ptr.vmem [resolvable:$true] %s1026_s7 }
  0x19   : > { %v458_v14 = vperm.slane %v289_v11, 0  ;;  %v416_v15 = vperm.slane %v1407_v2, 2  ;;  %v472_v16 = vperm.slane %v289_v11, 2  ;;  %v360_v17 = vperm.slane %v287_v3, 2  ;;  %s1425_s11 = scalar_lea.vmem %s1657_s0, %s1109_s8  ;;  %s1623_s8 = sshll.u32 %s1025_s5, 4  ;;  %s1029_s8 = int_to_ptr.hbm [resolvable:$true] %s1623_s8 }
  0x1a   : > { %v367_v18 = vperm.slane %v287_v3, 3  ;;  %v423_v19 = vperm.slane %v1407_v2, 3  ;;  %v311_v20 = vperm.slane %v286_v4, 3  ;;  %v318_v21 = vperm.slane %v286_v4, 4  ;;  %v1201_v38 = vld [vmem:[%s1425_s11 + $0x40] sm:$0xff]   ;;  %v1430_v50 = vld [vmem:[%s1425_s11 + $0x8] sm:$0xff]  }
  0x1b   : > { %v374_v22 = vperm.slane %v287_v3, 4  ;;  %v479_v23 = vperm.slane %v289_v11, 3  ;;  %v486_v24 = vperm.slane %v289_v11, 4  ;;  %v325_v25 = vperm.slane %v286_v4, 5  ;;  %v1197_v61 = vld [vmem:[%s1425_s11 + $0x20] sm:$0xff]   ;;  %v1437_v1 = vld [vmem:[%s1425_s11 + $0x68] sm:$0xff]  }
  0x1c   : > { %v430_v26 = vperm.slane %v1407_v2, 4  ;;  %v437_v27 = vperm.slane %v1407_v2, 5  ;;  %v493_v28 = vperm.slane %v289_v11, 5  ;;  %v381_v29 = vperm.slane %v287_v3, 5  ;;  %s1278_s9 = sshra.s32 %s1029_s8, 4  ;;  %s1279_s9 = int_to_ptr.hbm [resolvable:$true] %s1278_s9 }
  0x1d   : > { %v388_v30 = vperm.slane %v287_v3, 6  ;;  %v444_v31 = vperm.slane %v1407_v2, 6  ;;  %v332_v32 = vperm.slane %v286_v4, 6  ;;  %v339_v33 = vperm.slane %v286_v4, 7  ;;  %v1131_v4 = vld [vmem:[%s1425_s11] sm:$0xff]   ;;  %s1280_s10 = scalar_lea.hbm %s1279_s9, 32  ;;  %p1285_p1 = scmp.lt.s32.totalorder %s1279_s9, %s1661_s4 }
  0x1e   : > { %v395_v34 = vperm.slane %v287_v3, 7  ;;  %v500_v35 = vperm.slane %v289_v11, 6  ;;  %v507_v36 = vperm.slane %v289_v11, 7  ;;  %v451_v37 = vperm.slane %v1407_v2, 7  ;;  %p1281_p12 = scmp.ne.s32.totalorder %s1279_s9, %s1280_s10  ;;  %p1286_p2 = scmp.lt.s32.totalorder %s1284_s13, %s1280_s10 }
  0x1f   : > { %407 = vperm.xlu2 %1254, %v402_v5   ;;  %351 = vperm.xlu1 %1253, %v346_v6   ;;  %v1164_v39 = vunpack.c.l.bf16 %v1201_v38  ;;  %v1165_v44 = vunpack.c.h.bf16 %v1201_v38  ;;  %v1136_v54 = vunpack.c.l.bf16 %v1430_v50  ;;  %v1148_v3 = vunpack.c.l.bf16 %v1197_v61 }
  0x20   : > { %295 = vperm.xlu0 %1252, %v290_v7   ;;  %p1282_p13 = pnand %p1281_p12, %p1393_p5  ;;  %p1287_p3 = por %p1286_p2, %p1285_p1 }
  0x22   : > { %p1283_p0 = pneg %p1282_p13 }
  0x24   : > { %p1288_p4 = pnand %p1287_p3, %p1283_p0 }
  0x27   : > { %414 = vperm.xlu2 %1254, %v409_v8   ;;  %358 = vperm.xlu1 %1253, %v353_v9  }
  0x28   : > { %302 = vperm.xlu0 %1252, %v297_v10   ;;  %v1184_v10 = vunpack.c.l.bf16 %v1437_v1 }
  0x2f   : > { %470 = vperm.xlu1 %1253, %v465_v12   ;;  %309 = vperm.xlu2 %1254, %v304_v13  }
  0x30   : > { %463 = vperm.xlu0 %1252, %v458_v14   ;;  %v1132_v14 = vunpack.c.l.bf16 %v1131_v4 }
  0x37   : > { %421 = vperm.xlu1 %1253, %v416_v15   ;;  %477 = vperm.xlu2 %1254, %v472_v16   ;;  %v1442_v15 = vld [vmem:[%s1425_s11 + $0x48] sm:$0xff]  }
  0x38   : > { %365 = vperm.xlu0 %1252, %v360_v17  }
  0x3f   : > { %372 = vperm.xlu1 %1253, %v367_v18   ;;  %428 = vperm.xlu2 %1254, %v423_v19   ;;  %v1149_v19 = vunpack.c.h.bf16 %v1197_v61  ;;  %v1460_v61 = vld [vmem:[%s1425_s11 + $0x10] sm:$0xff]  }
  0x40   : > { %316 = vperm.xlu0 %1252, %v311_v20   ;;  %v1169_v20 = vunpack.c.h.bf16 %v1442_v15 }
  0x47   : > { %323 = vperm.xlu1 %1253, %v318_v21   ;;  %379 = vperm.xlu2 %1254, %v374_v22  }
  0x48   : > { %484 = vperm.xlu0 %1252, %v479_v23   ;;  %v1133_v23 = vunpack.c.h.bf16 %v1131_v4 }
  0x4f   : > { %491 = vperm.xlu1 %1253, %v486_v24   ;;  %330 = vperm.xlu2 %1254, %v325_v25  }
  0x50   : > { %435 = vperm.xlu0 %1252, %v430_v26  }
  0x57   : > { %442 = vperm.xlu1 %1253, %v437_v27   ;;  %498 = vperm.xlu2 %1254, %v493_v28  }
  0x58   : > { %386 = vperm.xlu0 %1252, %v381_v29  }
  0x5f   : > { %393 = vperm.xlu1 %1253, %v388_v30   ;;  %449 = vperm.xlu2 %1254, %v444_v31  }
  0x60   : > { %337 = vperm.xlu0 %1252, %v332_v32   ;;  %v1205_v32 = vld [vmem:[%s1425_s11 + $0x60] sm:$0xff]  }
  0x67   : > { %344 = vperm.xlu1 %1253, %v339_v33   ;;  %400 = vperm.xlu2 %1254, %v395_v34   ;;  %v1453_v34 = vld [vmem:[%s1425_s11 + $0x30] sm:$0xff]  }
  0x68   : > { %505 = vperm.xlu0 %1252, %v500_v35  }
  0x6f   : > { %512 = vperm.xlu1 %1253, %v507_v36  }
  0x70   : > { %456 = vperm.xlu0 %1252, %v451_v37  }
  0x79   : > { %v408_v40 = vpop.permute.xlu2 %407 }
  0x7a   : > { %v530_v41 = vmul.f32 %v1164_v39, %v408_v40 }
  0x7c   : > { %v659_v42 = vsel %vm546_vm0, %v530_v41, 0.0  ;;  %v1181_v41 = vunpack.c.h.bf16 %v1205_v32 }
  0x7d   : > { %v660_v43 = vrot.slane %v659_v42, 4 }
  0x7f   : > { %v661_v45 = vadd.f32 %v660_v43, %v659_v42 }
  0x81   : > { %v662_v46 = vrot.slane %v661_v45, 2  ;;  %v415_v47 = vpop.permute.xlu2 %414 }
  0x82   : > { %v531_v48 = vmul.f32 %v1165_v44, %v415_v47 }
  0x83   : > { %v663_v49 = vadd.f32 %v662_v46, %v661_v45  ;;  %v1156_v45 = vunpack.c.l.bf16 %v1453_v34 }
  0x84   : > { %v666_v51 = vsel %vm546_vm0, %v531_v48, 0.0 }
  0x85   : > { %v664_v52 = vrot.slane %v663_v49, 1  ;;  %v667_v53 = vrot.slane %v666_v51, 4 }
  0x87   : > { %v668_v55 = vadd.f32 %v667_v53, %v666_v51  ;;  %v665_v56 = vadd.f32 %v664_v52, %v663_v49 }
  0x89   : > { %v669_v57 = vrot.slane %v668_v55, 2  ;;  %v310_v58 = vpop.permute.xlu2 %309  ;;  %v787_v62 = vpack.c.bf16 %v665_v56, %v665_v56 }
  0x8a   : > { %v516_v59 = vmul.f32 %v1136_v54, %v310_v58  ;;  %v1180_v54 = vunpack.c.l.bf16 %v1205_v32 }
  0x8b   : > { %v670_v60 = vadd.f32 %v669_v57, %v668_v55  ;;  %v859_v5 = vunpack.c.l.b16 %v787_v62 }
  0x8c   : > { %v561_v0 = vsel %vm546_vm0, %v516_v59, 0.0 }
  0x8d   : > { %v671_v63 = vrot.slane %v670_v60, 1  ;;  %v562_v7 = vrot.slane %v561_v0, 4 }
  0x8f   : > { %v672_v2 = vadd.f32 %v671_v63, %v670_v60  ;;  %v563_v17 = vadd.f32 %v562_v7, %v561_v0 }
  0x91   : > { %v788_v6 = vpack.c.bf16 %v672_v2, %v672_v2  ;;  %v352_v8 = vpop.permute.xlu1 %351  ;;  %v478_v9 = vpop.permute.xlu2 %477  ;;  %v564_v24 = vrot.slane %v563_v17, 2 }
  0x92   : > { %v296_v11 = vpop.permute.xlu0 %295  ;;  %v522_v13 = vmul.f32 %v1148_v3, %v352_v8  ;;  %v540_v18 = vmul.f32 %v1184_v10, %v478_v9  ;;  %v1141_v10 = vunpack.c.h.bf16 %v1460_v61 }
  0x93   : > { %v860_v12 = vunpack.c.l.b16 %v788_v6  ;;  %v514_v22 = vmul.f32 %v1132_v14, %v296_v11  ;;  %v565_v39 = vadd.f32 %v564_v24, %v563_v17  ;;  %v1198_v6 = vld [vmem:[%s1425_s11 + $0x28] sm:$0xff]  }
  0x94   : > { %v603_v21 = vsel %vm546_vm0, %v522_v13, 0.0  ;;  %v729_v25 = vsel %vm546_vm0, %v540_v18, 0.0  ;;  %v1152_v18 = vunpack.c.l.bf16 %v1198_v6 }
  0x95   : > { %v1445_v16 = vsel %vm875_vm1, %v860_v12, %v859_v5  ;;  %v604_v28 = vrot.slane %v603_v21, 4  ;;  %v547_v33 = vsel %vm546_vm0, %v514_v22, 0.0  ;;  %v730_v35 = vrot.slane %v729_v25, 4 }
  0x96   : > { %v548_v43 = vrot.slane %v547_v33, 4  ;;  %v566_v48 = vrot.slane %v565_v39, 1  ;;  %v1168_v5 = vunpack.c.l.bf16 %v1442_v15 }
  0x97   : > { %v605_v42 = vadd.f32 %v604_v28, %v603_v21  ;;  %v731_v47 = vadd.f32 %v730_v35, %v729_v25 }
  0x98   : > { %v549_v56 = vadd.f32 %v548_v43, %v547_v33  ;;  %v567_v2 = vadd.f32 %v566_v48, %v565_v39  ;;  %v1137_v39 = vunpack.c.h.bf16 %v1430_v50  ;;  %v1140_v50 = vunpack.c.l.bf16 %v1460_v61 }
  0x99   : > { %v359_v26 = vpop.permute.xlu1 %358  ;;  %v429_v27 = vpop.permute.xlu2 %428  ;;  %v606_v55 = vrot.slane %v605_v42, 2  ;;  %v732_v62 = vrot.slane %v731_v47, 2 }
  0x9a   : > { %v523_v29 = vmul.f32 %v1149_v19, %v359_v26  ;;  %v533_v30 = vmul.f32 %v1169_v20, %v429_v27  ;;  %v303_v31 = vpop.permute.xlu0 %302  ;;  %v550_v8 = vrot.slane %v549_v56, 2  ;;  %v1153_v19 = vunpack.c.h.bf16 %v1198_v6  ;;  %v1469_v20 = vld [vmem:[%s1425_s11 + $0x70] sm:$0xff]  }
  0x9b   : > { %v515_v38 = vmul.f32 %v1133_v23, %v303_v31  ;;  %v607_v7 = vadd.f32 %v606_v55, %v605_v42  ;;  %v733_v14 = vadd.f32 %v732_v62, %v731_v47  ;;  %v773_v21 = vpack.c.bf16 %v567_v2, %v567_v2 }
  0x9c   : > { %v610_v36 = vsel %vm546_vm0, %v523_v29, 0.0  ;;  %v680_v37 = vsel %vm546_vm0, %v533_v30, 0.0  ;;  %v551_v27 = vadd.f32 %v550_v8, %v549_v56  ;;  %v1189_v35 = vunpack.c.h.bf16 %v1469_v20 }
  0x9d   : > { %v611_v40 = vrot.slane %v610_v36, 4  ;;  %v554_v44 = vsel %vm546_vm0, %v515_v38, 0.0  ;;  %v681_v46 = vrot.slane %v680_v37, 4  ;;  %v608_v26 = vrot.slane %v607_v7, 1 }
  0x9e   : > { %v555_v51 = vrot.slane %v554_v44, 4 }
  0x9f   : > { %v612_v49 = vadd.f32 %v611_v40, %v610_v36  ;;  %v682_v60 = vadd.f32 %v681_v46, %v680_v37  ;;  %v734_v36 = vrot.slane %v733_v14, 1  ;;  %v1475_v40 = vunpack.c.l.b16 %v773_v21 }
  0xa0   : > { %v556_v4 = vadd.f32 %v555_v51, %v554_v44  ;;  %v609_v44 = vadd.f32 %v608_v26, %v607_v7 }
  0xa1   : > { %v471_v52 = vpop.permute.xlu1 %470  ;;  %v380_v53 = vpop.permute.xlu2 %379  ;;  %v613_v3 = vrot.slane %v612_v49, 2  ;;  %v683_v11 = vrot.slane %v682_v60, 2 }
  0xa2   : > { %v539_v57 = vmul.f32 %v1181_v41, %v471_v52  ;;  %v526_v58 = vmul.f32 %v1156_v45, %v380_v53  ;;  %v464_v59 = vpop.permute.xlu0 %463  ;;  %v557_v23 = vrot.slane %v556_v4, 2  ;;  %v552_v45 = vrot.slane %v551_v27, 1  ;;  %v1478_v53 = vld [vmem:[%s1425_s11 + $0x58] sm:$0xff]  }
  0xa3   : > { %v538_v9 = vmul.f32 %v1180_v54, %v464_v59  ;;  %v614_v22 = vadd.f32 %v613_v3, %v612_v49  ;;  %v684_v31 = vadd.f32 %v683_v11, %v682_v60  ;;  %v735_v54 = vadd.f32 %v734_v36, %v733_v14 }
  0xa4   : > { %v722_v63 = vsel %vm546_vm0, %v539_v57, 0.0  ;;  %v631_v0 = vsel %vm546_vm0, %v526_v58, 0.0  ;;  %v558_v42 = vadd.f32 %v557_v23, %v556_v4  ;;  %v553_v2 = vadd.f32 %v552_v45, %v551_v27 }
  0xa5   : > { %v723_v12 = vrot.slane %v722_v63, 4  ;;  %v632_v13 = vrot.slane %v631_v0, 4  ;;  %v715_v17 = vsel %vm546_vm0, %v538_v9, 0.0  ;;  %v615_v41 = vrot.slane %v614_v22, 1 }
  0xa6   : > { %v716_v15 = vrot.slane %v715_v17, 4  ;;  %v685_v48 = vrot.slane %v684_v31, 1  ;;  %v559_v58 = vrot.slane %v558_v42, 1 }
  0xa7   : > { %v724_v32 = vadd.f32 %v723_v12, %v722_v63  ;;  %v633_v33 = vadd.f32 %v632_v13, %v631_v0  ;;  %v616_v57 = vadd.f32 %v615_v41, %v614_v22  ;;  %v779_v0 = vpack.c.bf16 %v609_v44, %v609_v44 }
  0xa8   : > { %v717_v43 = vadd.f32 %v716_v15, %v715_v17  ;;  %v686_v6 = vadd.f32 %v685_v48, %v684_v31  ;;  %v797_v13 = vpack.c.bf16 %v735_v54, %v735_v54  ;;  %v560_v17 = vadd.f32 %v559_v58, %v558_v42  ;;  %v1492_v54 = vld [vmem:[%s1425_s11 + $0x38] sm:$0xff]  }
  0xa9   : > { %v422_v24 = vpop.permute.xlu1 %421  ;;  %v331_v25 = vpop.permute.xlu2 %330  ;;  %v725_v49 = vrot.slane %v724_v32, 2  ;;  %v634_v51 = vrot.slane %v633_v33, 2  ;;  %v780_v14 = vpack.c.bf16 %v616_v57, %v616_v57  ;;  %v851_v21 = vunpack.c.l.b16 %v779_v0 }
  0xaa   : > { %v532_v28 = vmul.f32 %v1168_v5, %v422_v24  ;;  %v519_v29 = vmul.f32 %v1141_v10, %v331_v25  ;;  %v366_v30 = vpop.permute.xlu0 %365  ;;  %v718_v59 = vrot.slane %v717_v43, 2  ;;  %v1176_v5 = vunpack.c.l.bf16 %v1478_v53 }
  0xab   : > { %v524_v47 = vmul.f32 %v1152_v18, %v366_v30  ;;  %v726_v7 = vadd.f32 %v725_v49, %v724_v32  ;;  %v635_v8 = vadd.f32 %v634_v51, %v633_v33  ;;  %v771_v22 = vpack.c.bf16 %v553_v2, %v553_v2 }
  0xac   : > { %v673_v37 = vsel %vm546_vm0, %v532_v28, 0.0  ;;  %v582_v38 = vsel %vm546_vm0, %v519_v29, 0.0  ;;  %v719_v18 = vadd.f32 %v718_v59, %v717_v43  ;;  %v790_v15 = vpack.c.bf16 %v686_v6, %v686_v6 }
  0xad   : > { %v674_v46 = vrot.slane %v673_v37, 4  ;;  %v583_v52 = vrot.slane %v582_v38, 4  ;;  %v617_v56 = vsel %vm546_vm0, %v524_v47, 0.0  ;;  %v727_v24 = vrot.slane %v726_v7, 1 }
  0xae   : > { %v618_v60 = vrot.slane %v617_v56, 4  ;;  %v636_v25 = vrot.slane %v635_v8, 1  ;;  %v1486_v31 = vunpack.c.l.b16 %v797_v13  ;;  %v852_v32 = vunpack.c.l.b16 %v780_v14 }
  0xaf   : > { %v675_v55 = vadd.f32 %v674_v46, %v673_v37  ;;  %v584_v9 = vadd.f32 %v583_v52, %v582_v38  ;;  %v772_v33 = vpack.c.bf16 %v560_v17, %v560_v17  ;;  %v1185_v43 = vunpack.c.h.bf16 %v1437_v1 }
  0xb0   : > { %v619_v11 = vadd.f32 %v618_v60, %v617_v56  ;;  %v843_v44 = vunpack.c.l.b16 %v771_v22  ;;  %v728_v45 = vadd.f32 %v727_v24, %v726_v7  ;;  %v1489_v48 = vunpack.c.l.b16 %v790_v15 }
  0xb1   : > { %v373_v62 = vpop.permute.xlu1 %372  ;;  %v499_v63 = vpop.permute.xlu2 %498  ;;  %v676_v10 = vrot.slane %v675_v55, 2  ;;  %v585_v26 = vrot.slane %v584_v9, 2  ;;  %v637_v49 = vadd.f32 %v636_v25, %v635_v8  ;;  %v844_v56 = vunpack.c.l.b16 %v772_v33 }
  0xb2   : > { %v525_v3 = vmul.f32 %v1153_v19, %v373_v62  ;;  %v317_v4 = vpop.permute.xlu0 %316  ;;  %v543_v12 = vmul.f32 %v1189_v35, %v499_v63  ;;  %v620_v28 = vrot.slane %v619_v11, 2  ;;  %v720_v35 = vrot.slane %v719_v18, 1 }
  0xb3   : > { %v517_v19 = vmul.f32 %v1137_v39, %v317_v4  ;;  %v677_v27 = vadd.f32 %v676_v10, %v675_v55  ;;  %v586_v46 = vadd.f32 %v585_v26, %v584_v9  ;;  %v1495_v55 = vsel %vm875_vm1, %v852_v32, %v851_v21 }
  0xb4   : > { %v624_v61 = vsel %vm546_vm0, %v525_v3, 0.0  ;;  %v750_v29 = vsel %vm546_vm0, %v543_v12, 0.0  ;;  %v621_v52 = vadd.f32 %v620_v28, %v619_v11  ;;  %v721_v57 = vadd.f32 %v720_v35, %v719_v18 }
  0xb5   : > { %v625_v23 = vrot.slane %v624_v61, 4  ;;  %v568_v30 = vsel %vm546_vm0, %v517_v19, 0.0  ;;  %v751_v47 = vrot.slane %v750_v29, 4  ;;  %v678_v51 = vrot.slane %v677_v27, 1 }
  0xb6   : > { %v569_v39 = vrot.slane %v568_v30, 4  ;;  %v796_v62 = vpack.c.bf16 %v728_v45, %v728_v45  ;;  %v587_v63 = vrot.slane %v586_v46, 1  ;;  %v1161_v2 = vunpack.c.h.bf16 %v1492_v54 }
  0xb7   : > { %v626_v38 = vadd.f32 %v625_v23, %v624_v61  ;;  %v752_v0 = vadd.f32 %v751_v47, %v750_v29  ;;  %v783_v3 = vpack.c.bf16 %v637_v49, %v637_v49  ;;  %v679_v4 = vadd.f32 %v678_v51, %v677_v27  ;;  %v1203_v27 = vld [vmem:[%s1425_s11 + $0x50] sm:$0xff]  }
  0xb8   : > { %v570_v1 = vadd.f32 %v569_v39, %v568_v30  ;;  %v622_v6 = vrot.slane %v621_v52, 1  ;;  %v876_v8 = vsel %vm875_vm1, %v844_v56, %v843_v44  ;;  %v795_v9 = vpack.c.bf16 %v721_v57, %v721_v57 }
  0xb9   : > { %v324_v36 = vpop.permute.xlu1 %323  ;;  %v450_v37 = vpop.permute.xlu2 %449  ;;  %v627_v58 = vrot.slane %v626_v38, 2  ;;  %v868_v21 = vunpack.c.l.b16 %v796_v62  ;;  %v588_v22 = vadd.f32 %v587_v63, %v586_v46  ;;  %v753_v23 = vrot.slane %v752_v0, 2 }
  0xba   : > { %v518_v41 = vmul.f32 %v1140_v50, %v324_v36  ;;  %v485_v42 = vpop.permute.xlu0 %484  ;;  %v1188_v50 = vunpack.c.l.bf16 %v1469_v20  ;;  %v536_v10 = vmul.f32 %v1176_v5, %v450_v37  ;;  %v571_v13 = vrot.slane %v570_v1, 2 }
  0xbb   : > { %v541_v60 = vmul.f32 %v1185_v43, %v485_v42  ;;  %v628_v12 = vadd.f32 %v627_v58, %v626_v38  ;;  %v1504_v15 = vunpack.c.l.b16 %v783_v3  ;;  %v789_v24 = vpack.c.bf16 %v679_v4, %v679_v4 }
  0xbc   : > { %v575_v59 = vsel %vm546_vm0, %v518_v41, 0.0  ;;  %v623_v25 = vadd.f32 %v622_v6, %v621_v52  ;;  %v701_v28 = vsel %vm546_vm0, %v536_v10, 0.0  ;;  %v867_v32 = vunpack.c.l.b16 %v795_v9 }
  0xbd   : > { %v736_v7 = vsel %vm546_vm0, %v541_v60, 0.0  ;;  %v576_v20 = vrot.slane %v575_v59, 4  ;;  %v629_v33 = vrot.slane %v628_v12, 1  ;;  %v572_v35 = vadd.f32 %v571_v13, %v570_v1 }
  0xbe   : > { %v737_v14 = vrot.slane %v736_v7, 4  ;;  %v776_v37 = vpack.c.bf16 %v588_v22, %v588_v22  ;;  %v754_v38 = vadd.f32 %v753_v23, %v752_v0  ;;  %v1172_v39 = vunpack.c.l.bf16 %v1203_v27 }
  0xbf   : > { %v577_v5 = vadd.f32 %v576_v20, %v575_v59  ;;  %v1173_v41 = vunpack.c.h.bf16 %v1203_v27  ;;  %v861_v42 = vunpack.c.l.b16 %v789_v24  ;;  %v702_v43 = vrot.slane %v701_v28, 4 }
  0xc0   : > { %v738_v36 = vadd.f32 %v737_v14, %v736_v7  ;;  %v781_v46 = vpack.c.bf16 %v623_v25, %v623_v25  ;;  %v1157_v52 = vunpack.c.h.bf16 %v1453_v34  ;;  %v630_v56 = vadd.f32 %v629_v33, %v628_v12  ;;  %v1520_v34 = vld [vmem:[%s1425_s11 + $0x18] sm:$0xff]  }
  0xc1   : > { %v492_v11 = vpop.permute.xlu1 %491  ;;  %v401_v61 = vpop.permute.xlu2 %400  ;;  %v578_v47 = vrot.slane %v577_v5, 2  ;;  %v573_v57 = vrot.slane %v572_v35, 1  ;;  %v903_v59 = vsel %vm875_vm1, %v868_v21, %v867_v32  ;;  %v1516_v60 = vunpack.c.l.b16 %v776_v37 }
  0xc2   : > { %v542_v17 = vmul.f32 %v1188_v50, %v492_v11  ;;  %v436_v18 = vpop.permute.xlu0 %435  ;;  %v529_v19 = vmul.f32 %v1161_v2, %v401_v61  ;;  %v1513_v50 = vsel %vm877_vm2, %v1475_v40, %v876_v8  ;;  %v739_v58 = vrot.slane %v738_v36, 2 }
  0xc3   : > { %v534_v49 = vmul.f32 %v1172_v39, %v436_v18  ;;  %v755_v62 = vrot.slane %v754_v38, 1  ;;  %v703_v0 = vadd.f32 %v702_v43, %v701_v28  ;;  %v1524_v6 = vsel %vm877_vm2, %v861_v42, %v1445_v16  ;;  %v1542_v39 = vld [vmem:[%s1425_s11 + $0x78] sm:$0xff]  }
  0xc4   : > { %v743_v26 = vsel %vm546_vm0, %v542_v17, 0.0  ;;  %v652_v30 = vsel %vm546_vm0, %v529_v19, 0.0  ;;  %v853_v40 = vunpack.c.l.b16 %v781_v46  ;;  %v579_v7 = vadd.f32 %v578_v47, %v577_v5 }
  0xc5   : > { %v744_v29 = vrot.slane %v743_v26, 4  ;;  %v653_v45 = vrot.slane %v652_v30, 4  ;;  %v687_v4 = vsel %vm546_vm0, %v534_v49, 0.0  ;;  %v782_v9 = vpack.c.bf16 %v630_v56, %v630_v56 }
  0xc6   : > { %v574_v20 = vadd.f32 %v573_v57, %v572_v35  ;;  %v740_v10 = vadd.f32 %v739_v58, %v738_v36  ;;  %v688_v61 = vrot.slane %v687_v4, 4  ;;  %v1160_v13 = vunpack.c.l.bf16 %v1492_v54  ;;  %v1128_v54 = vld [vmem:[%s1659_s2 + $0x8] sm:$0xff] }
  0xc7   : > { %v745_v44 = vadd.f32 %v744_v29, %v743_v26  ;;  %v654_v3 = vadd.f32 %v653_v45, %v652_v30  ;;  %v1144_v14 = vunpack.c.l.bf16 %v1520_v34  ;;  %v704_v17 = vrot.slane %v703_v0, 2  ;;  %936 = vmatpush.bf16.msra.mxu0 %v1128_v54  ;;  %1209 = vmatpush.bf16.msra.mxu1 %v1128_v54 }
  0xc8   : > { %v1530_v22 = vadd.f32 %v755_v62, %v754_v38  ;;  %v580_v23 = vrot.slane %v579_v7, 1  ;;  %v1534_v19 = vsel %vm877_vm2, %v1486_v31, %v903_v59  ;;  %v890_v26 = vsel %vm877_vm2, %v853_v40, %v1495_v55  ;;  %v1127_v55 = vld [vmem:[%s1659_s2] sm:$0xff] }
  0xc9   : > { %v443_v51 = vpop.permute.xlu1 %442  ;;  %v746_v2 = vrot.slane %v745_v44, 2  ;;  %v655_v16 = vrot.slane %v654_v3, 2  ;;  %v854_v27 = vunpack.c.l.b16 %v782_v9  ;;  %v774_v5 = vpack.c.bf16 %v574_v20, %v574_v20 }
  0xca   : > { %v387_v1 = vpop.permute.xlu0 %386  ;;  %v535_v63 = vmul.f32 %v1173_v41, %v443_v51  ;;  %v741_v30 = vrot.slane %v740_v10, 1  ;;  %v689_v32 = vadd.f32 %v688_v61, %v687_v4  ;;  %v705_v31 = vadd.f32 %v704_v17, %v703_v0 }
  0xcb   : > { %v527_v8 = vmul.f32 %v1157_v52, %v387_v1  ;;  %v747_v18 = vadd.f32 %v746_v2, %v745_v44  ;;  %v656_v37 = vadd.f32 %v655_v16, %v654_v3  ;;  %v581_v41 = vadd.f32 %v580_v23, %v579_v7  ;;  %937 = vmatpush.bf16.msra.mxu0 %v1127_v55 }
  0xcc   : > { %v694_v11 = vsel %vm546_vm0, %v535_v63, 0.0  ;;  %v846_v45 = vunpack.c.l.b16 %v774_v5  ;;  %v742_v51 = vadd.f32 %v741_v30, %v740_v10  ;;  %v690_v52 = vrot.slane %v689_v32, 2  ;;  %1210 = vmatpush.bf16.msra.mxu1 %v1127_v55 }
  0xcd   : > { %v638_v12 = vsel %vm546_vm0, %v527_v8, 0.0  ;;  %v695_v24 = vrot.slane %v694_v11, 4  ;;  %v748_v36 = vrot.slane %v747_v18, 1  ;;  %v1145_v56 = vunpack.c.h.bf16 %v1520_v34 }
  0xce   : > { %v639_v21 = vrot.slane %v638_v12, 4  ;;  %v1192_v57 = vunpack.c.l.bf16 %v1542_v39  ;;  %v657_v1 = vrot.slane %v656_v37, 1  ;;  %v1552_v63 = vsel %vm879_vm3, %v854_v27, %v890_v26 }
  0xcf   : > { %v696_v42 = vadd.f32 %v695_v24, %v694_v11  ;;  %v749_v58 = vadd.f32 %v748_v36, %v747_v18  ;;  %v775_v0 = vpack.c.bf16 %v581_v41, %v581_v41  ;;  %v706_v2 = vrot.slane %v705_v31, 1 }
  0xd0   : > { %v640_v28 = vadd.f32 %v639_v21, %v638_v12  ;;  %v1556_v40 = vsel %vm879_vm3, %v846_v45, %v1513_v50  ;;  %v798_v20 = vpack.c.bf16 %v742_v51, %v742_v51  ;;  %v691_v10 = vadd.f32 %v690_v52, %v689_v32 }
  0xd1   : > { %v394_v25 = vpop.permute.xlu1 %393  ;;  %v697_v3 = vrot.slane %v696_v42, 2  ;;  %v799_v12 = vpack.c.bf16 %v749_v58, %v749_v58  ;;  %v1193_v50 = vunpack.c.h.bf16 %v1542_v39  ;;  %v1561_v26 = vadd.f32 %v706_v2, %v705_v31 }
  0xd2   : > { %v338_v29 = vpop.permute.xlu0 %337  ;;  %v528_v33 = vmul.f32 %v1160_v13, %v394_v25  ;;  %v641_v38 = vrot.slane %v640_v28, 2  ;;  %v658_v13 = vadd.f32 %v657_v1, %v656_v37  ;;  %v692_v27 = vrot.slane %v691_v10, 1 }
  0xd3   : > { %v520_v35 = vmul.f32 %v1144_v14, %v338_v29  ;;  %v698_v18 = vadd.f32 %v697_v3, %v696_v42  ;;  %v847_v29 = vunpack.c.l.b16 %v775_v0  ;;  %v1564_v30 = vunpack.c.l.b16 %v798_v20 }
  0xd4   : > { %v645_v43 = vsel %vm546_vm0, %v528_v33, 0.0  ;;  %v642_v46 = vadd.f32 %v641_v38, %v640_v28  ;;  %v1177_v28 = vunpack.c.h.bf16 %v1478_v53  ;;  %v786_v36 = vpack.c.bf16 %v658_v13, %v658_v13 }
  0xd5   : > { %v589_v44 = vsel %vm546_vm0, %v520_v35, 0.0  ;;  %v646_v47 = vrot.slane %v645_v43, 4  ;;  %v1566_v35 = vunpack.c.l.b16 %v799_v12  ;;  %v699_v55 = vrot.slane %v698_v18, 1 }
  0xd6   : > { %v590_v49 = vrot.slane %v589_v44, 4  ;;  %v643_v34 = vrot.slane %v642_v46, 1 }
  0xd7   : > { %v647_v59 = vadd.f32 %v646_v47, %v645_v43  ;;  %v700_v58 = vadd.f32 %v699_v55, %v698_v18 }
  0xd8   : > { %v591_v62 = vadd.f32 %v590_v49, %v589_v44  ;;  %v644_v23 = vadd.f32 %v643_v34, %v642_v46  ;;  %v693_v44 = vadd.f32 %v692_v27, %v691_v10 }
  0xd9   : > { %v345_v4 = vpop.permute.xlu1 %344  ;;  %v648_v7 = vrot.slane %v647_v59, 2 }
  0xda   : > { %v592_v8 = vrot.slane %v591_v62, 2  ;;  %v506_v9 = vpop.permute.xlu0 %505  ;;  %v521_v11 = vmul.f32 %v1145_v56, %v345_v4  ;;  %v784_v41 = vpack.c.bf16 %v644_v23, %v644_v23  ;;  %v791_v4 = vpack.c.bf16 %v693_v44, %v693_v44 }
  0xdb   : > { %v544_v61 = vmul.f32 %v1192_v57, %v506_v9  ;;  %v649_v14 = vadd.f32 %v648_v7, %v647_v59 }
  0xdc   : > { %v593_v17 = vadd.f32 %v592_v8, %v591_v62  ;;  %v596_v16 = vsel %vm546_vm0, %v521_v11, 0.0  ;;  %v856_v1 = vunpack.c.l.b16 %v784_v41  ;;  %v882_v8 = vsel %vm881_vm4, %v847_v29, %v1556_v40 }
  0xdd   : > { %v757_v21 = vsel %vm546_vm0, %v544_v61, 0.0  ;;  %v650_v24 = vrot.slane %v649_v14, 1  ;;  %v597_v54 = vrot.slane %v596_v16, 4  ;;  %v892_v11 = vsel %vm881_vm4, %v1504_v15, %v1552_v63 }
  0xde   : > { %v594_v25 = vrot.slane %v593_v17, 1  ;;  %v758_v5 = vrot.slane %v757_v21, 4  ;;  %v792_v61 = vpack.c.bf16 %v700_v58, %v700_v58  ;;  %v884_v23 = vsel %vm883_vm5, %v1516_v60, %v882_v8 }
  0xdf   : > { %v651_v32 = vadd.f32 %v650_v24, %v649_v14  ;;  %v598_v33 = vadd.f32 %v597_v54, %v596_v16  ;;  %v893_v14 = vsel %vm883_vm5, %v856_v1, %v892_v11  ;;  %v800_v24 = vpack.c.bf16 %v1530_v22, %v1530_v22 }
  0xe0   : > { %v595_v37 = vadd.f32 %v594_v25, %v593_v17  ;;  %v759_v38 = vadd.f32 %v758_v5, %v757_v21  ;;  %v858_v17 = vunpack.c.l.b16 %v786_v36  ;;  %v863_v15 = vunpack.c.l.b16 %v791_v4 }
  0xe1   : > { %v513_v39 = vpop.permute.xlu1 %512  ;;  %v599_v42 = vrot.slane %v598_v33, 2  ;;  %v785_v45 = vpack.c.bf16 %v651_v32, %v651_v32  ;;  %v864_v54 = vunpack.c.l.b16 %v792_v61  ;;  %v793_v29 = vpack.c.bf16 %v1561_v26, %v1561_v26 }
  0xe2   : > { %v545_v31 = vmul.f32 %v1193_v50, %v513_v39  ;;  %v457_v43 = vpop.permute.xlu0 %456  ;;  %v760_v46 = vrot.slane %v759_v38, 2  ;;  %v777_v51 = vpack.c.bf16 %v595_v37, %v595_v37  ;;  %v905_v60 = vsel %vm879_vm3, %v1564_v30, %v1534_v19 }
  0xe3   : > { %v537_v53 = vmul.f32 %v1177_v28, %v457_v43  ;;  %v600_v47 = vadd.f32 %v599_v42, %v598_v33  ;;  %v857_v0 = vunpack.c.l.b16 %v785_v45  ;;  %v898_v37 = vsel %vm879_vm3, %v1489_v48, %v1524_v6 }
  0xe4   : > { %v764_v49 = vsel %vm546_vm0, %v545_v31, 0.0  ;;  %v761_v52 = vadd.f32 %v760_v46, %v759_v38  ;;  %v849_v9 = vunpack.c.l.b16 %v777_v51  ;;  %v906_v38 = vsel %vm881_vm4, %v1566_v35, %v905_v60  ;;  %v1255_v46 = vld [vmem:[%s1660_s3] ss:$0 sm:$0xff] }
  0xe5   : > { %v765_v56 = vrot.slane %v764_v49, 4  ;;  %v708_v57 = vsel %vm546_vm0, %v537_v53, 0.0  ;;  %v601_v59 = vrot.slane %v600_v47, 1  ;;  %v894_v16 = vsel %vm885_vm6, %v857_v0, %v893_v14 }
  0xe6   : > { %v709_v62 = vrot.slane %v708_v57, 4  ;;  %v762_v2 = vrot.slane %v761_v52, 1  ;;  %v886_v25 = vsel %vm885_vm6, %v849_v9, %v884_v23  ;;  %v895_v28 = vsel %vm887_vm7, %v858_v17, %v894_v16 }
  0xe7   : > { %v766_v3 = vadd.f32 %v765_v56, %v764_v49  ;;  %v602_v34 = vadd.f32 %v601_v59, %v600_v47  ;;  %v872_v39 = vunpack.c.l.b16 %v800_v24  ;;  %v899_v26 = vsel %vm881_vm4, %v863_v15, %v898_v37 }
  0xe8   : > { %v710_v7 = vadd.f32 %v709_v62, %v708_v57  ;;  %v763_v20 = vadd.f32 %v762_v2, %v761_v52  ;;  %v900_v19 = vsel %vm883_vm5, %v864_v54, %v899_v26  ;;  %v865_v30 = vunpack.c.l.b16 %v793_v29 }
  0xe9   : > { %v767_v10 = vrot.slane %v766_v3, 2  ;;  %v778_v12 = vpack.c.bf16 %v602_v34, %v602_v34  ;;  %v907_v31 = vsel %vm883_vm5, %v872_v39, %v906_v38 }
  0xea   : > { %v711_v13 = vrot.slane %v710_v7, 2  ;;  %v801_v50 = vpack.c.bf16 %v763_v20, %v763_v20  ;;  %v901_v48 = vsel %vm885_vm6, %v865_v30, %v900_v19 }
  0xeb   : > { %v768_v18 = vadd.f32 %v767_v10, %v766_v3  ;;  %v850_v21 = vunpack.c.l.b16 %v778_v12 }
  0xec   : > { %v712_v40 = vadd.f32 %v711_v13, %v710_v7  ;;  %v873_v22 = vunpack.c.l.b16 %v801_v50 }
  0xed   : > { %v769_v63 = vrot.slane %v768_v18, 1  ;;  %v888_v5 = vsel %vm887_vm7, %v850_v21, %v886_v25 }
  0xee   : > { %v713_v27 = vrot.slane %v712_v40, 1  ;;  %v910_v33 = vpack.c.b16 %v895_v28, %v888_v5  ;;  %v908_v44 = vsel %vm885_vm6, %v873_v22, %v907_v31 }
  0xef   : > { %v770_v32 = vadd.f32 %v769_v63, %v768_v18 }
  0xf0   : > { %v714_v36 = vadd.f32 %v713_v27, %v712_v40  ;;  %1120 = vmatmul.msk.bf16.vlgmr.msra.gmra.mxu0 %vm546_vm0, %v910_v33 }
  0xf1   : > { %v802_v55 = vpack.c.bf16 %v770_v32, %v770_v32 }
  0xf2   : > { %v794_v41 = vpack.c.bf16 %v714_v36, %v714_v36 }
  0xf3   : > { %v874_v42 = vunpack.c.l.b16 %v802_v55 }
  0xf4   : > { %v866_v43 = vunpack.c.l.b16 %v794_v41 }
  0xf5   : > { %v909_v6 = vsel %vm887_vm7, %v874_v42, %v908_v44 }
  0xf6   : > { %v902_v35 = vsel %vm887_vm7, %v866_v43, %v901_v48 }
  0xf7   : > { %v911_v45 = vpack.c.b16 %v909_v6, %v902_v35 }
  0xf9   : > { %1121 = vmatmul.msk.bf16.vlgmr.msra.gmra.mxu1 %vm546_vm0, %v911_v45 }
 0x16d   : > { %v939_v53 = vpop.f32.mrf.mxu0 }
 0x16e   : > { %v940_v47 = vadd.f32 %v1255_v46, %v939_v53 }
 0x170   : > { %v949_v49 = vmul.f32 %v940_v47, %v940_v47 }
 0x172   : > { %953 = vadd.xlane.f32.xlu2 %v949_v49 }
 0x175   : > { %v941_v51 = vpop.f32.mrf.mxu0 }
 0x176   : > { %v944_v52 = vpop.f32.mrf.mxu1  ;;  %v942_v56 = vadd.f32 %v1255_v46, %v941_v51 }
 0x177   : > { %v945_v57 = vadd.f32 %v1255_v46, %v944_v52 }
 0x178   : > { %v950_v1 = vmul.f32 %v942_v56, %v942_v56 }
 0x179   : > { %v951_v58 = vmul.f32 %v945_v57, %v945_v57 }
 0x17a   : > { %955 = vadd.xlane.f32.xlu0 %v950_v1 }
 0x17b   : > { %957 = vadd.xlane.f32.xlu1 %v951_v58 }
 0x17e   : > { %v946_v59 = vpop.f32.mrf.mxu1 }
 0x17f   : > { %v1606_v62 = vadd.f32 %v1255_v46, %v946_v59 }
 0x181   : > { %v952_v0 = vmul.f32 %v1606_v62, %v1606_v62 }
 0x183   : > { %959 = vadd.xlane.f32.xlu2 %v952_v0 }
 0x1e5   : > { %v954_v2 = vpop.xlane.xlu2 %953 }
 0x1e6   : > { %v961_v3 = vadd.f32 1e-12, %v954_v2 }
 0x1e8   : > { %1256 = vrsqrt.f32 %v961_v3  ;;  %vm971_vm9 = vweird.f32 %v961_v3 }
 0x1ed   : > { %v956_v34 = vpop.xlane.xlu0 %955 }
 0x1ee   : > { %v958_v4 = vpop.xlane.xlu1 %957  ;;  %v1257_v7 = vpop.eup %1256  ;;  %v962_v9 = vadd.f32 1e-12, %v956_v34 }
 0x1ef   : > { %v963_v8 = vadd.f32 1e-12, %v958_v4  ;;  %v966_v20 = vmul.f32 %v1257_v7, %v961_v3  ;;  %vm972_vm8 = vweird.f32 %v1257_v7 }
 0x1f0   : > { %vm973_vm10 = vmor %vm971_vm9, %vm972_vm8  ;;  %vm981_vm15 = vweird.f32 %v962_v9 }
 0x1f1   : > { %1258 = vrsqrt.f32 %v963_v8  ;;  %v967_v10 = vmul.f32 %v1257_v7, %v966_v20  ;;  %vm991_vm13 = vweird.f32 %v963_v8 }
 0x1f2   : > { %1260 = vrsqrt.f32 %v962_v9 }
 0x1f3   : > { %v968_v11 = vmul.f32 0.5, %v967_v10 }
 0x1f5   : > { %v969_v61 = vsub.f32 1.5, %v968_v11 }
 0x1f6   : > { %v960_v12 = vpop.xlane.xlu2 %959 }
 0x1f7   : > { %v1259_v13 = vpop.eup %1258  ;;  %v964_v14 = vadd.f32 1e-12, %v960_v12  ;;  %v970_v18 = vmul.f32 %v1257_v7, %v969_v61 }
 0x1f8   : > { %v1261_v17 = vpop.eup %1260  ;;  %v986_v16 = vmul.f32 %v1259_v13, %v963_v8  ;;  %vm992_vm11 = vweird.f32 %v1259_v13 }
 0x1f9   : > { %v976_v21 = vmul.f32 %v1261_v17, %v962_v9  ;;  %1262 = vrsqrt.f32 %v964_v14  ;;  %v974_v50 = vsel %vm973_vm10, %v1257_v7, %v970_v18  ;;  %vm982_vm12 = vweird.f32 %v1261_v17  ;;  %vm993_vm14 = vmor %vm991_vm13, %vm992_vm11 }
 0x1fa   : > { %v987_v40 = vmul.f32 %v1259_v13, %v986_v16  ;;  %v1005_v23 = vmul.f32 %v974_v50, %v940_v47  ;;  %vm983_vm0 = vmor %vm981_vm15, %vm982_vm12  ;;  %vm1001_vm2 = vweird.f32 %v964_v14 }
 0x1fb   : > { %v977_v24 = vmul.f32 %v1261_v17, %v976_v21 }
 0x1fc   : > { %v988_v15 = vmul.f32 0.5, %v987_v40  ;;  %1009 = vst [vmem:[%s1613_s28] sm:$0xff] %v1005_v23 }
 0x1fd   : > { %v978_v63 = vmul.f32 0.5, %v977_v24 }
 0x1fe   : > { %v989_v25 = vsub.f32 1.5, %v988_v15 }
 0x1ff   : > { %v1263_v54 = vpop.eup %1262  ;;  %v979_v27 = vsub.f32 1.5, %v978_v63 }
 0x200   : > { %v990_v5 = vmul.f32 %v1259_v13, %v989_v25  ;;  %v996_v28 = vmul.f32 %v1263_v54, %v964_v14  ;;  %vm1002_vm1 = vweird.f32 %v1263_v54 }
 0x201   : > { %v980_v29 = vmul.f32 %v1261_v17, %v979_v27  ;;  %vm1003_vm3 = vmor %vm1001_vm2, %vm1002_vm1 }
 0x202   : > { %v994_v60 = vsel %vm993_vm14, %v1259_v13, %v990_v5  ;;  %v997_v32 = vmul.f32 %v1263_v54, %v996_v28 }
 0x203   : > { %v1007_v33 = vmul.f32 %v994_v60, %v945_v57  ;;  %v984_v22 = vsel %vm983_vm0, %v1261_v17, %v980_v29 }
 0x204   : > { %v1006_v36 = vmul.f32 %v984_v22, %v942_v56  ;;  %v998_v37 = vmul.f32 0.5, %v997_v32 }
 0x205   : > { %1011 = vst [vmem:[%s1613_s28 + $0x10] sm:$0xff] %v1007_v33 }
 0x206   : > { %1010 = vst [vmem:[%s1613_s28 + $0x8] sm:$0xff] %v1006_v36  ;;  %v999_v38 = vsub.f32 1.5, %v998_v37 }
 0x208   : > { %v1000_v39 = vmul.f32 %v1263_v54, %v999_v38 }
 0x20a   : > { %v1004_v55 = vsel %vm1003_vm3, %v1263_v54, %v1000_v39 }
 0x20b   : > { %v1008_v26 = vmul.f32 %v1004_v55, %v1606_v62 }
 0x20d   : > { %1012 = vst [vmem:[%s1613_s28 + $0x18] sm:$0xff] %v1008_v26 }
 0x20e   : > { %1291 = shalt.err (!%p1288_p4)
}
 0x20f   : > { %s1328_s20 = smov 128   ;;  %s1329_s22 = smov 8  }
 0x210   : > { %1211 = dma.vmem_to_hbm [thread:$0]  (%p1393_p5), %s1027_s7, 512, %s1029_s8, %s1014_s6, %s1328_s20, %s1328_s20, %s1329_s22  }
 0x211 PF: > { %p1217_p7 = scmp.ge.s32.totalorder %s1326_s18, 2  ;;  %s1043_s23 = sand.u32 1, %s1314_s15  }
 0x212   : > { %s1044_s27 = scalar_lea.sflag [#allocation3], %s1043_s23 }
 0x213   : > { %p1214_p8 = pnand %p1217_p7, %p1397_p6 }
 0x215   : > { %p1215_p9 = pneg %p1214_p8 }
 0x217   : > { %1309 = dma.done.wait (%p1215_p9), %s1044_s27, 512  }
 0x218   : > { %1311 = vsyncadd (%p1215_p9), %s1044_s27, 4294966784  ;;  %p14_p10 = scmp.ge.s32.totalorder %s1380_s21, 4   ;;  %s1664_s15 = smov %s1318_s16 }
 0x219   : > { %s1665_s16 = smov %s1322_s17  ;;  %s1666_s17 = smov %s1391_s24 }
 0x21a   : > { %s1667_s18 = smov %s1380_s21  ;;  %16 = sbr.rel (!%p14_p10) target bundleno = 3 (0x3), region = 74 }
 0x21f   :  { %1050 = vsyncpa [#allocation3], 1 }
 0x220   :  { %1052 = vsyncpa [#allocation3 + $0x1], 1 }

// kernel: tpu_custom_call.1
= control target key start
LH: loop header
LB: loop body
LE: loop exit
PB: predicated region body
PF: predicated region fallthrough
CT: control target
= control target key end

     0   :  { %9 = vsyncpa [#allocation3], 0  ;;  %s1657_s0 = inlined_call_operand.vmem [shape: bf16[64,8,32], index: 0, kind: input, shape index: {}]   ;;  %s1658_s1 = inlined_call_operand.vmem [shape: f32[64,8], index: 1, kind: input, shape index: {}]   ;;  %s1659_s2 = inlined_call_operand.vmem [shape: bf16[32,128], index: 2, kind: input, shape index: {}]   ;;  %s1660_s3 = inlined_call_operand.vmem [shape: f32[1,128], index: 3, kind: input, shape index: {}]   ;;  %s1661_s4 = inlined_call_operand.hbm [shape: f32[64,128], index: 4, kind: output, shape index: {}]  }
   0x1   :  { %11 = vsyncpa [#allocation3 + $0x1], 0  ;;  %s1355_s15 = smov 0   ;;  %s1357_s16 = smov 0  }
   0x2   :  { %s1359_s17 = smov 0   ;;  %s1361_s18 = smov 0  }
   0x3 LB: > { %s1376_s19 = sadd.s32 4294967295, %s1326_s18   ;;  %s1103_s20 = sadd.s32 4294967294, %s1326_s18   ;;  %s1326_s18 = sphi %s1361_s18, %s1667_s18   ;;  %s1322_s17 = sphi %s1359_s17, %s1666_s17   ;;  %s1318_s16 = sphi %s1357_s16, %s1665_s16   ;;  %s1314_s15 = sphi %s1355_s15, %s1664_s15  }
   0x4   : > { %s1380_s21 = sadd.s32 1, %s1326_s18   ;;  %s118_s22 = sadd.s32 1, %s1322_s17 }
   0x5   : > { %s115_s23 = ssub.s32 %s1326_s18, %s1380_s21  ;;  %p128_p0 = scmp.ne.s32.totalorder %s1322_s17, %s1318_s16 }
   0x6   : > { %p116_p1 = scmp.eq.s32.totalorder %s115_s23, 0  ;;  %p129_p2 = scmp.eq.s32.totalorder %s1376_s19, 1 }
   0x7   : > { %p134_p3 = scmp.ne.s32.totalorder %s1318_s16, %s1314_s15  ;;  %p135_p4 = scmp.eq.s32.totalorder %s1103_s20, 1 }
   0x8   : > { %s1391_s24 = scalar_select %p116_p1, %s1322_s17, %s118_s22  }
   0x9   : > { %p1393_p5 = por %p129_p2, %p128_p0  ;;  %p1397_p6 = por %p135_p4, %p134_p3 }
   0xa   : > { %p1106_p7 = scmp.ge.s32.totalorder %s1326_s18, 1  ;;  %p177_p8 = scmp.lt.s32.totalorder %s1326_s18, 3 }
   0xc   : > { %p178_p9 = pnand %p1106_p7, %p177_p8 }
   0xd   : > { %s1110_s27 = sshll.u32 (!%p178_p9), %s1376_s19, 2  ;;  %s1417_s6 = sshll.u32 (!%p178_p9), %s1376_s19, 5 }
   0xe   : > { %181 = sbr.rel (%p178_p9) target bundleno = 529 (0x211), region = 36  ;;  %p215_p10 = scmp.lt.s32.totalorder (!%p178_p9), %s1110_s27, 7 }
   0xf   : > { %p209_p11 = scmp.lt.s32.totalorder (!%p178_p9), %s1417_s6, 63  ;;  %s205_s23 = sand.u32 (!%p178_p9), 1, %s1318_s16  }
  0x10   : > { %s1284_s13 = scalar_lea.hbm (!%p178_p9), %s1661_s4, 64 }
  0x13   : > { %v291_v0 = vlaneseq  ;;  %s1669_s27 = smov (!%p215_p10, %s1110_s27), 7  ;;  %vm546_vm0 = vcmask 261120   ;;  %vm875_vm1 = vcmask 1041409   ;;  %vm877_vm2 = vcmask 1042434  }
  0x14   : > { %s1111_s28 = sshll.u32 %s1669_s27, 3  ;;  %vm879_vm3 = vcmask 1043459   ;;  %vm881_vm4 = vcmask 1044484   ;;  %vm883_vm5 = vcmask 1045509   ;;  %vm885_vm6 = vcmask 1046534   ;;  %s1107_s27 = sshll.u32 %s205_s23, 5 }
  0x15   : > { %v292_v1 = vshrl.u32 %v291_v0, 7  ;;  %s218_s5 = scalar_lea.vmem %s1658_s1, %s1111_s28  ;;  %vm887_vm7 = vcmask 1047559   ;;  %s1613_s28 = scalar_lea.vmem [#allocation2], %s1107_s27 }
  0x16   : > { %v1407_v2 = vld [vmem:[%s218_s5 + $0x10] sm:$0xff]  ;;  %v287_v3 = vld [vmem:[%s218_s5 + $0x8] sm:$0xff]  ;;  %v286_v4 = vld [vmem:[%s218_s5] sm:$0xff]  ;;  %s210_s7 = scalar_select %p209_p11, %s1417_s6, 63 }
  0x17   : > { %1254 = vset.pattern.permute.xlu2 %v292_v1  ;;  %1253 = vset.pattern.permute.xlu1 %v292_v1  ;;  %v402_v5 = vperm.slane %v1407_v2, 0  ;;  %v346_v6 = vperm.slane %v287_v3, 0  ;;  %v290_v7 = vperm.slane %v286_v4, 0  ;;  %v409_v8 = vperm.slane %v1407_v2, 1  ;;  %v289_v11 = vld [vmem:[%s218_s5 + $0x18] sm:$0xff]  ;;  %s1025_s5 = scalar_lea.hbm %s1661_s4, %s1417_s6  ;;  %s1014_s6 = scalar_lea.sflag [#allocation3], %s205_s23 }
  0x18   : > { %1252 = vset.pattern.permute.xlu0 %v292_v1  ;;  %v353_v9 = vperm.slane %v287_v3, 1  ;;  %v297_v10 = vperm.slane %v286_v4, 1  ;;  %v465_v12 = vperm.slane %v289_v11, 1  ;;  %v304_v13 = vperm.slane %v286_v4, 2  ;;  %s1109_s8 = sshll.u32 %s210_s7, 2  ;;  %s1026_s7 = sshll.u32 %s1613_s28, 4  ;;  %s1027_s7 = int_to_ptr.vmem [resolvable:$true] %s1026_s7 }
  0x19   : > { %v458_v14 = vperm.slane %v289_v11, 0  ;;  %v416_v15 = vperm.slane %v1407_v2, 2  ;;  %v472_v16 = vperm.slane %v289_v11, 2  ;;  %v360_v17 = vperm.slane %v287_v3, 2  ;;  %s1425_s11 = scalar_lea.vmem %s1657_s0, %s1109_s8  ;;  %s1623_s8 = sshll.u32 %s1025_s5, 4  ;;  %s1029_s8 = int_to_ptr.hbm [resolvable:$true] %s1623_s8 }
  0x1a   : > { %v367_v18 = vperm.slane %v287_v3, 3  ;;  %v423_v19 = vperm.slane %v1407_v2, 3  ;;  %v311_v20 = vperm.slane %v286_v4, 3  ;;  %v318_v21 = vperm.slane %v286_v4, 4  ;;  %v1201_v38 = vld [vmem:[%s1425_s11 + $0x40] sm:$0xff]   ;;  %v1430_v50 = vld [vmem:[%s1425_s11 + $0x8] sm:$0xff]  }
  0x1b   : > { %v374_v22 = vperm.slane %v287_v3, 4  ;;  %v479_v23 = vperm.slane %v289_v11, 3  ;;  %v486_v24 = vperm.slane %v289_v11, 4  ;;  %v325_v25 = vperm.slane %v286_v4, 5  ;;  %v1197_v61 = vld [vmem:[%s1425_s11 + $0x20] sm:$0xff]   ;;  %v1437_v1 = vld [vmem:[%s1425_s11 + $0x68] sm:$0xff]  }
  0x1c   : > { %v430_v26 = vperm.slane %v1407_v2, 4  ;;  %v437_v27 = vperm.slane %v1407_v2, 5  ;;  %v493_v28 = vperm.slane %v289_v11, 5  ;;  %v381_v29 = vperm.slane %v287_v3, 5  ;;  %s1278_s9 = sshra.s32 %s1029_s8, 4  ;;  %s1279_s9 = int_to_ptr.hbm [resolvable:$true] %s1278_s9 }
  0x1d   : > { %v388_v30 = vperm.slane %v287_v3, 6  ;;  %v444_v31 = vperm.slane %v1407_v2, 6  ;;  %v332_v32 = vperm.slane %v286_v4, 6  ;;  %v339_v33 = vperm.slane %v286_v4, 7  ;;  %v1131_v4 = vld [vmem:[%s1425_s11] sm:$0xff]   ;;  %s1280_s10 = scalar_lea.hbm %s1279_s9, 32  ;;  %p1285_p1 = scmp.lt.s32.totalorder %s1279_s9, %s1661_s4 }
  0x1e   : > { %v395_v34 = vperm.slane %v287_v3, 7  ;;  %v500_v35 = vperm.slane %v289_v11, 6  ;;  %v507_v36 = vperm.slane %v289_v11, 7  ;;  %v451_v37 = vperm.slane %v1407_v2, 7  ;;  %p1281_p12 = scmp.ne.s32.totalorder %s1279_s9, %s1280_s10  ;;  %p1286_p2 = scmp.lt.s32.totalorder %s1284_s13, %s1280_s10 }
  0x1f   : > { %407 = vperm.xlu2 %1254, %v402_v5   ;;  %351 = vperm.xlu1 %1253, %v346_v6   ;;  %v1164_v39 = vunpack.c.l.bf16 %v1201_v38  ;;  %v1165_v44 = vunpack.c.h.bf16 %v1201_v38  ;;  %v1136_v54 = vunpack.c.l.bf16 %v1430_v50  ;;  %v1148_v3 = vunpack.c.l.bf16 %v1197_v61 }
  0x20   : > { %295 = vperm.xlu0 %1252, %v290_v7   ;;  %p1282_p13 = pnand %p1281_p12, %p1393_p5  ;;  %p1287_p3 = por %p1286_p2, %p1285_p1 }
  0x22   : > { %p1283_p0 = pneg %p1282_p13 }
  0x24   : > { %p1288_p4 = pnand %p1287_p3, %p1283_p0 }
  0x27   : > { %414 = vperm.xlu2 %1254, %v409_v8   ;;  %358 = vperm.xlu1 %1253, %v353_v9  }
  0x28   : > { %302 = vperm.xlu0 %1252, %v297_v10   ;;  %v1184_v10 = vunpack.c.l.bf16 %v1437_v1 }
  0x2f   : > { %470 = vperm.xlu1 %1253, %v465_v12   ;;  %309 = vperm.xlu2 %1254, %v304_v13  }
  0x30   : > { %463 = vperm.xlu0 %1252, %v458_v14   ;;  %v1132_v14 = vunpack.c.l.bf16 %v1131_v4 }
  0x37   : > { %421 = vperm.xlu1 %1253, %v416_v15   ;;  %477 = vperm.xlu2 %1254, %v472_v16   ;;  %v1442_v15 = vld [vmem:[%s1425_s11 + $0x48] sm:$0xff]  }
  0x38   : > { %365 = vperm.xlu0 %1252, %v360_v17  }
  0x3f   : > { %372 = vperm.xlu1 %1253, %v367_v18   ;;  %428 = vperm.xlu2 %1254, %v423_v19   ;;  %v1149_v19 = vunpack.c.h.bf16 %v1197_v61  ;;  %v1460_v61 = vld [vmem:[%s1425_s11 + $0x10] sm:$0xff]  }
  0x40   : > { %316 = vperm.xlu0 %1252, %v311_v20   ;;  %v1169_v20 = vunpack.c.h.bf16 %v1442_v15 }
  0x47   : > { %323 = vperm.xlu1 %1253, %v318_v21   ;;  %379 = vperm.xlu2 %1254, %v374_v22  }
  0x48   : > { %484 = vperm.xlu0 %1252, %v479_v23   ;;  %v1133_v23 = vunpack.c.h.bf16 %v1131_v4 }
  0x4f   : > { %491 = vperm.xlu1 %1253, %v486_v24   ;;  %330 = vperm.xlu2 %1254, %v325_v25  }
  0x50   : > { %435 = vperm.xlu0 %1252, %v430_v26  }
  0x57   : > { %442 = vperm.xlu1 %1253, %v437_v27   ;;  %498 = vperm.xlu2 %1254, %v493_v28  }
  0x58   : > { %386 = vperm.xlu0 %1252, %v381_v29  }
  0x5f   : > { %393 = vperm.xlu1 %1253, %v388_v30   ;;  %449 = vperm.xlu2 %1254, %v444_v31  }
  0x60   : > { %337 = vperm.xlu0 %1252, %v332_v32   ;;  %v1205_v32 = vld [vmem:[%s1425_s11 + $0x60] sm:$0xff]  }
  0x67   : > { %344 = vperm.xlu1 %1253, %v339_v33   ;;  %400 = vperm.xlu2 %1254, %v395_v34   ;;  %v1453_v34 = vld [vmem:[%s1425_s11 + $0x30] sm:$0xff]  }
  0x68   : > { %505 = vperm.xlu0 %1252, %v500_v35  }
  0x6f   : > { %512 = vperm.xlu1 %1253, %v507_v36  }
  0x70   : > { %456 = vperm.xlu0 %1252, %v451_v37  }
  0x79   : > { %v408_v40 = vpop.permute.xlu2 %407 }
  0x7a   : > { %v530_v41 = vmul.f32 %v1164_v39, %v408_v40 }
  0x7c   : > { %v659_v42 = vsel %vm546_vm0, %v530_v41, 0.0  ;;  %v1181_v41 = vunpack.c.h.bf16 %v1205_v32 }
  0x7d   : > { %v660_v43 = vrot.slane %v659_v42, 4 }
  0x7f   : > { %v661_v45 = vadd.f32 %v660_v43, %v659_v42 }
  0x81   : > { %v662_v46 = vrot.slane %v661_v45, 2  ;;  %v415_v47 = vpop.permute.xlu2 %414 }
  0x82   : > { %v531_v48 = vmul.f32 %v1165_v44, %v415_v47 }
  0x83   : > { %v663_v49 = vadd.f32 %v662_v46, %v661_v45  ;;  %v1156_v45 = vunpack.c.l.bf16 %v1453_v34 }
  0x84   : > { %v666_v51 = vsel %vm546_vm0, %v531_v48, 0.0 }
  0x85   : > { %v664_v52 = vrot.slane %v663_v49, 1  ;;  %v667_v53 = vrot.slane %v666_v51, 4 }
  0x87   : > { %v668_v55 = vadd.f32 %v667_v53, %v666_v51  ;;  %v665_v56 = vadd.f32 %v664_v52, %v663_v49 }
  0x89   : > { %v669_v57 = vrot.slane %v668_v55, 2  ;;  %v310_v58 = vpop.permute.xlu2 %309  ;;  %v787_v62 = vpack.c.bf16 %v665_v56, %v665_v56 }
  0x8a   : > { %v516_v59 = vmul.f32 %v1136_v54, %v310_v58  ;;  %v1180_v54 = vunpack.c.l.bf16 %v1205_v32 }
  0x8b   : > { %v670_v60 = vadd.f32 %v669_v57, %v668_v55  ;;  %v859_v5 = vunpack.c.l.b16 %v787_v62 }
  0x8c   : > { %v561_v0 = vsel %vm546_vm0, %v516_v59, 0.0 }
  0x8d   : > { %v671_v63 = vrot.slane %v670_v60, 1  ;;  %v562_v7 = vrot.slane %v561_v0, 4 }
  0x8f   : > { %v672_v2 = vadd.f32 %v671_v63, %v670_v60  ;;  %v563_v17 = vadd.f32 %v562_v7, %v561_v0 }
  0x91   : > { %v788_v6 = vpack.c.bf16 %v672_v2, %v672_v2  ;;  %v352_v8 = vpop.permute.xlu1 %351  ;;  %v478_v9 = vpop.permute.xlu2 %477  ;;  %v564_v24 = vrot.slane %v563_v17, 2 }
  0x92   : > { %v296_v11 = vpop.permute.xlu0 %295  ;;  %v522_v13 = vmul.f32 %v1148_v3, %v352_v8  ;;  %v540_v18 = vmul.f32 %v1184_v10, %v478_v9  ;;  %v1141_v10 = vunpack.c.h.bf16 %v1460_v61 }
  0x93   : > { %v860_v12 = vunpack.c.l.b16 %v788_v6  ;;  %v514_v22 = vmul.f32 %v1132_v14, %v296_v11  ;;  %v565_v39 = vadd.f32 %v564_v24, %v563_v17  ;;  %v1198_v6 = vld [vmem:[%s1425_s11 + $0x28] sm:$0xff]  }
  0x94   : > { %v603_v21 = vsel %vm546_vm0, %v522_v13, 0.0  ;;  %v729_v25 = vsel %vm546_vm0, %v540_v18, 0.0  ;;  %v1152_v18 = vunpack.c.l.bf16 %v1198_v6 }
  0x95   : > { %v1445_v16 = vsel %vm875_vm1, %v860_v12, %v859_v5  ;;  %v604_v28 = vrot.slane %v603_v21, 4  ;;  %v547_v33 = vsel %vm546_vm0, %v514_v22, 0.0  ;;  %v730_v35 = vrot.slane %v729_v25, 4 }
  0x96   : > { %v548_v43 = vrot.slane %v547_v33, 4  ;;  %v566_v48 = vrot.slane %v565_v39, 1  ;;  %v1168_v5 = vunpack.c.l.bf16 %v1442_v15 }
  0x97   : > { %v605_v42 = vadd.f32 %v604_v28, %v603_v21  ;;  %v731_v47 = vadd.f32 %v730_v35, %v729_v25 }
  0x98   : > { %v549_v56 = vadd.f32 %v548_v43, %v547_v33  ;;  %v567_v2 = vadd.f32 %v566_v48, %v565_v39  ;;  %v1137_v39 = vunpack.c.h.bf16 %v1430_v50  ;;  %v1140_v50 = vunpack.c.l.bf16 %v1460_v61 }
  0x99   : > { %v359_v26 = vpop.permute.xlu1 %358  ;;  %v429_v27 = vpop.permute.xlu2 %428  ;;  %v606_v55 = vrot.slane %v605_v42, 2  ;;  %v732_v62 = vrot.slane %v731_v47, 2 }
  0x9a   : > { %v523_v29 = vmul.f32 %v1149_v19, %v359_v26  ;;  %v533_v30 = vmul.f32 %v1169_v20, %v429_v27  ;;  %v303_v31 = vpop.permute.xlu0 %302  ;;  %v550_v8 = vrot.slane %v549_v56, 2  ;;  %v1153_v19 = vunpack.c.h.bf16 %v1198_v6  ;;  %v1469_v20 = vld [vmem:[%s1425_s11 + $0x70] sm:$0xff]  }
  0x9b   : > { %v515_v38 = vmul.f32 %v1133_v23, %v303_v31  ;;  %v607_v7 = vadd.f32 %v606_v55, %v605_v42  ;;  %v733_v14 = vadd.f32 %v732_v62, %v731_v47  ;;  %v773_v21 = vpack.c.bf16 %v567_v2, %v567_v2 }
  0x9c   : > { %v610_v36 = vsel %vm546_vm0, %v523_v29, 0.0  ;;  %v680_v37 = vsel %vm546_vm0, %v533_v30, 0.0  ;;  %v551_v27 = vadd.f32 %v550_v8, %v549_v56  ;;  %v1189_v35 = vunpack.c.h.bf16 %v1469_v20 }
  0x9d   : > { %v611_v40 = vrot.slane %v610_v36, 4  ;;  %v554_v44 = vsel %vm546_vm0, %v515_v38, 0.0  ;;  %v681_v46 = vrot.slane %v680_v37, 4  ;;  %v608_v26 = vrot.slane %v607_v7, 1 }
  0x9e   : > { %v555_v51 = vrot.slane %v554_v44, 4 }
  0x9f   : > { %v612_v49 = vadd.f32 %v611_v40, %v610_v36  ;;  %v682_v60 = vadd.f32 %v681_v46, %v680_v37  ;;  %v734_v36 = vrot.slane %v733_v14, 1  ;;  %v1475_v40 = vunpack.c.l.b16 %v773_v21 }
  0xa0   : > { %v556_v4 = vadd.f32 %v555_v51, %v554_v44  ;;  %v609_v44 = vadd.f32 %v608_v26, %v607_v7 }
  0xa1   : > { %v471_v52 = vpop.permute.xlu1 %470  ;;  %v380_v53 = vpop.permute.xlu2 %379  ;;  %v613_v3 = vrot.slane %v612_v49, 2  ;;  %v683_v11 = vrot.slane %v682_v60, 2 }
  0xa2   : > { %v539_v57 = vmul.f32 %v1181_v41, %v471_v52  ;;  %v526_v58 = vmul.f32 %v1156_v45, %v380_v53  ;;  %v464_v59 = vpop.permute.xlu0 %463  ;;  %v557_v23 = vrot.slane %v556_v4, 2  ;;  %v552_v45 = vrot.slane %v551_v27, 1  ;;  %v1478_v53 = vld [vmem:[%s1425_s11 + $0x58] sm:$0xff]  }
  0xa3   : > { %v538_v9 = vmul.f32 %v1180_v54, %v464_v59  ;;  %v614_v22 = vadd.f32 %v613_v3, %v612_v49  ;;  %v684_v31 = vadd.f32 %v683_v11, %v682_v60  ;;  %v735_v54 = vadd.f32 %v734_v36, %v733_v14 }
  0xa4   : > { %v722_v63 = vsel %vm546_vm0, %v539_v57, 0.0  ;;  %v631_v0 = vsel %vm546_vm0, %v526_v58, 0.0  ;;  %v558_v42 = vadd.f32 %v557_v23, %v556_v4  ;;  %v553_v2 = vadd.f32 %v552_v45, %v551_v27 }
  0xa5   : > { %v723_v12 = vrot.slane %v722_v63, 4  ;;  %v632_v13 = vrot.slane %v631_v0, 4  ;;  %v715_v17 = vsel %vm546_vm0, %v538_v9, 0.0  ;;  %v615_v41 = vrot.slane %v614_v22, 1 }
  0xa6   : > { %v716_v15 = vrot.slane %v715_v17, 4  ;;  %v685_v48 = vrot.slane %v684_v31, 1  ;;  %v559_v58 = vrot.slane %v558_v42, 1 }
  0xa7   : > { %v724_v32 = vadd.f32 %v723_v12, %v722_v63  ;;  %v633_v33 = vadd.f32 %v632_v13, %v631_v0  ;;  %v616_v57 = vadd.f32 %v615_v41, %v614_v22  ;;  %v779_v0 = vpack.c.bf16 %v609_v44, %v609_v44 }
  0xa8   : > { %v717_v43 = vadd.f32 %v716_v15, %v715_v17  ;;  %v686_v6 = vadd.f32 %v685_v48, %v684_v31  ;;  %v797_v13 = vpack.c.bf16 %v735_v54, %v735_v54  ;;  %v560_v17 = vadd.f32 %v559_v58, %v558_v42  ;;  %v1492_v54 = vld [vmem:[%s1425_s11 + $0x38] sm:$0xff]  }
  0xa9   : > { %v422_v24 = vpop.permute.xlu1 %421  ;;  %v331_v25 = vpop.permute.xlu2 %330  ;;  %v725_v49 = vrot.slane %v724_v32, 2  ;;  %v634_v51 = vrot.slane %v633_v33, 2  ;;  %v780_v14 = vpack.c.bf16 %v616_v57, %v616_v57  ;;  %v851_v21 = vunpack.c.l.b16 %v779_v0 }
  0xaa   : > { %v532_v28 = vmul.f32 %v1168_v5, %v422_v24  ;;  %v519_v29 = vmul.f32 %v1141_v10, %v331_v25  ;;  %v366_v30 = vpop.permute.xlu0 %365  ;;  %v718_v59 = vrot.slane %v717_v43, 2  ;;  %v1176_v5 = vunpack.c.l.bf16 %v1478_v53 }
  0xab   : > { %v524_v47 = vmul.f32 %v1152_v18, %v366_v30  ;;  %v726_v7 = vadd.f32 %v725_v49, %v724_v32  ;;  %v635_v8 = vadd.f32 %v634_v51, %v633_v33  ;;  %v771_v22 = vpack.c.bf16 %v553_v2, %v553_v2 }
  0xac   : > { %v673_v37 = vsel %vm546_vm0, %v532_v28, 0.0  ;;  %v582_v38 = vsel %vm546_vm0, %v519_v29, 0.0  ;;  %v719_v18 = vadd.f32 %v718_v59, %v717_v43  ;;  %v790_v15 = vpack.c.bf16 %v686_v6, %v686_v6 }
  0xad   : > { %v674_v46 = vrot.slane %v673_v37, 4  ;;  %v583_v52 = vrot.slane %v582_v38, 4  ;;  %v617_v56 = vsel %vm546_vm0, %v524_v47, 0.0  ;;  %v727_v24 = vrot.slane %v726_v7, 1 }
  0xae   : > { %v618_v60 = vrot.slane %v617_v56, 4  ;;  %v636_v25 = vrot.slane %v635_v8, 1  ;;  %v1486_v31 = vunpack.c.l.b16 %v797_v13  ;;  %v852_v32 = vunpack.c.l.b16 %v780_v14 }
  0xaf   : > { %v675_v55 = vadd.f32 %v674_v46, %v673_v37  ;;  %v584_v9 = vadd.f32 %v583_v52, %v582_v38  ;;  %v772_v33 = vpack.c.bf16 %v560_v17, %v560_v17  ;;  %v1185_v43 = vunpack.c.h.bf16 %v1437_v1 }
  0xb0   : > { %v619_v11 = vadd.f32 %v618_v60, %v617_v56  ;;  %v843_v44 = vunpack.c.l.b16 %v771_v22  ;;  %v728_v45 = vadd.f32 %v727_v24, %v726_v7  ;;  %v1489_v48 = vunpack.c.l.b16 %v790_v15 }
  0xb1   : > { %v373_v62 = vpop.permute.xlu1 %372  ;;  %v499_v63 = vpop.permute.xlu2 %498  ;;  %v676_v10 = vrot.slane %v675_v55, 2  ;;  %v585_v26 = vrot.slane %v584_v9, 2  ;;  %v637_v49 = vadd.f32 %v636_v25, %v635_v8  ;;  %v844_v56 = vunpack.c.l.b16 %v772_v33 }
  0xb2   : > { %v525_v3 = vmul.f32 %v1153_v19, %v373_v62  ;;  %v317_v4 = vpop.permute.xlu0 %316  ;;  %v543_v12 = vmul.f32 %v1189_v35, %v499_v63  ;;  %v620_v28 = vrot.slane %v619_v11, 2  ;;  %v720_v35 = vrot.slane %v719_v18, 1 }
  0xb3   : > { %v517_v19 = vmul.f32 %v1137_v39, %v317_v4  ;;  %v677_v27 = vadd.f32 %v676_v10, %v675_v55  ;;  %v586_v46 = vadd.f32 %v585_v26, %v584_v9  ;;  %v1495_v55 = vsel %vm875_vm1, %v852_v32, %v851_v21 }
  0xb4   : > { %v624_v61 = vsel %vm546_vm0, %v525_v3, 0.0  ;;  %v750_v29 = vsel %vm546_vm0, %v543_v12, 0.0  ;;  %v621_v52 = vadd.f32 %v620_v28, %v619_v11  ;;  %v721_v57 = vadd.f32 %v720_v35, %v719_v18 }
  0xb5   : > { %v625_v23 = vrot.slane %v624_v61, 4  ;;  %v568_v30 = vsel %vm546_vm0, %v517_v19, 0.0  ;;  %v751_v47 = vrot.slane %v750_v29, 4  ;;  %v678_v51 = vrot.slane %v677_v27, 1 }
  0xb6   : > { %v569_v39 = vrot.slane %v568_v30, 4  ;;  %v796_v62 = vpack.c.bf16 %v728_v45, %v728_v45  ;;  %v587_v63 = vrot.slane %v586_v46, 1  ;;  %v1161_v2 = vunpack.c.h.bf16 %v1492_v54 }
  0xb7   : > { %v626_v38 = vadd.f32 %v625_v23, %v624_v61  ;;  %v752_v0 = vadd.f32 %v751_v47, %v750_v29  ;;  %v783_v3 = vpack.c.bf16 %v637_v49, %v637_v49  ;;  %v679_v4 = vadd.f32 %v678_v51, %v677_v27  ;;  %v1203_v27 = vld [vmem:[%s1425_s11 + $0x50] sm:$0xff]  }
  0xb8   : > { %v570_v1 = vadd.f32 %v569_v39, %v568_v30  ;;  %v622_v6 = vrot.slane %v621_v52, 1  ;;  %v876_v8 = vsel %vm875_vm1, %v844_v56, %v843_v44  ;;  %v795_v9 = vpack.c.bf16 %v721_v57, %v721_v57 }
  0xb9   : > { %v324_v36 = vpop.permute.xlu1 %323  ;;  %v450_v37 = vpop.permute.xlu2 %449  ;;  %v627_v58 = vrot.slane %v626_v38, 2  ;;  %v868_v21 = vunpack.c.l.b16 %v796_v62  ;;  %v588_v22 = vadd.f32 %v587_v63, %v586_v46  ;;  %v753_v23 = vrot.slane %v752_v0, 2 }
  0xba   : > { %v518_v41 = vmul.f32 %v1140_v50, %v324_v36  ;;  %v485_v42 = vpop.permute.xlu0 %484  ;;  %v1188_v50 = vunpack.c.l.bf16 %v1469_v20  ;;  %v536_v10 = vmul.f32 %v1176_v5, %v450_v37  ;;  %v571_v13 = vrot.slane %v570_v1, 2 }
  0xbb   : > { %v541_v60 = vmul.f32 %v1185_v43, %v485_v42  ;;  %v628_v12 = vadd.f32 %v627_v58, %v626_v38  ;;  %v1504_v15 = vunpack.c.l.b16 %v783_v3  ;;  %v789_v24 = vpack.c.bf16 %v679_v4, %v679_v4 }
  0xbc   : > { %v575_v59 = vsel %vm546_vm0, %v518_v41, 0.0  ;;  %v623_v25 = vadd.f32 %v622_v6, %v621_v52  ;;  %v701_v28 = vsel %vm546_vm0, %v536_v10, 0.0  ;;  %v867_v32 = vunpack.c.l.b16 %v795_v9 }
  0xbd   : > { %v736_v7 = vsel %vm546_vm0, %v541_v60, 0.0  ;;  %v576_v20 = vrot.slane %v575_v59, 4  ;;  %v629_v33 = vrot.slane %v628_v12, 1  ;;  %v572_v35 = vadd.f32 %v571_v13, %v570_v1 }
  0xbe   : > { %v737_v14 = vrot.slane %v736_v7, 4  ;;  %v776_v37 = vpack.c.bf16 %v588_v22, %v588_v22  ;;  %v754_v38 = vadd.f32 %v753_v23, %v752_v0  ;;  %v1172_v39 = vunpack.c.l.bf16 %v1203_v27 }
  0xbf   : > { %v577_v5 = vadd.f32 %v576_v20, %v575_v59  ;;  %v1173_v41 = vunpack.c.h.bf16 %v1203_v27  ;;  %v861_v42 = vunpack.c.l.b16 %v789_v24  ;;  %v702_v43 = vrot.slane %v701_v28, 4 }
  0xc0   : > { %v738_v36 = vadd.f32 %v737_v14, %v736_v7  ;;  %v781_v46 = vpack.c.bf16 %v623_v25, %v623_v25  ;;  %v1157_v52 = vunpack.c.h.bf16 %v1453_v34  ;;  %v630_v56 = vadd.f32 %v629_v33, %v628_v12  ;;  %v1520_v34 = vld [vmem:[%s1425_s11 + $0x18] sm:$0xff]  }
  0xc1   : > { %v492_v11 = vpop.permute.xlu1 %491  ;;  %v401_v61 = vpop.permute.xlu2 %400  ;;  %v578_v47 = vrot.slane %v577_v5, 2  ;;  %v573_v57 = vrot.slane %v572_v35, 1  ;;  %v903_v59 = vsel %vm875_vm1, %v868_v21, %v867_v32  ;;  %v1516_v60 = vunpack.c.l.b16 %v776_v37 }
  0xc2   : > { %v542_v17 = vmul.f32 %v1188_v50, %v492_v11  ;;  %v436_v18 = vpop.permute.xlu0 %435  ;;  %v529_v19 = vmul.f32 %v1161_v2, %v401_v61  ;;  %v1513_v50 = vsel %vm877_vm2, %v1475_v40, %v876_v8  ;;  %v739_v58 = vrot.slane %v738_v36, 2 }
  0xc3   : > { %v534_v49 = vmul.f32 %v1172_v39, %v436_v18  ;;  %v755_v62 = vrot.slane %v754_v38, 1  ;;  %v703_v0 = vadd.f32 %v702_v43, %v701_v28  ;;  %v1524_v6 = vsel %vm877_vm2, %v861_v42, %v1445_v16  ;;  %v1542_v39 = vld [vmem:[%s1425_s11 + $0x78] sm:$0xff]  }
  0xc4   : > { %v743_v26 = vsel %vm546_vm0, %v542_v17, 0.0  ;;  %v652_v30 = vsel %vm546_vm0, %v529_v19, 0.0  ;;  %v853_v40 = vunpack.c.l.b16 %v781_v46  ;;  %v579_v7 = vadd.f32 %v578_v47, %v577_v5 }
  0xc5   : > { %v744_v29 = vrot.slane %v743_v26, 4  ;;  %v653_v45 = vrot.slane %v652_v30, 4  ;;  %v687_v4 = vsel %vm546_vm0, %v534_v49, 0.0  ;;  %v782_v9 = vpack.c.bf16 %v630_v56, %v630_v56 }
  0xc6   : > { %v574_v20 = vadd.f32 %v573_v57, %v572_v35  ;;  %v740_v10 = vadd.f32 %v739_v58, %v738_v36  ;;  %v688_v61 = vrot.slane %v687_v4, 4  ;;  %v1160_v13 = vunpack.c.l.bf16 %v1492_v54  ;;  %v1128_v54 = vld [vmem:[%s1659_s2 + $0x8] sm:$0xff] }
  0xc7   : > { %v745_v44 = vadd.f32 %v744_v29, %v743_v26  ;;  %v654_v3 = vadd.f32 %v653_v45, %v652_v30  ;;  %v1144_v14 = vunpack.c.l.bf16 %v1520_v34  ;;  %v704_v17 = vrot.slane %v703_v0, 2  ;;  %936 = vmatpush.bf16.msra.mxu0 %v1128_v54  ;;  %1209 = vmatpush.bf16.msra.mxu1 %v1128_v54 }
  0xc8   : > { %v1530_v22 = vadd.f32 %v755_v62, %v754_v38  ;;  %v580_v23 = vrot.slane %v579_v7, 1  ;;  %v1534_v19 = vsel %vm877_vm2, %v1486_v31, %v903_v59  ;;  %v890_v26 = vsel %vm877_vm2, %v853_v40, %v1495_v55  ;;  %v1127_v55 = vld [vmem:[%s1659_s2] sm:$0xff] }
  0xc9   : > { %v443_v51 = vpop.permute.xlu1 %442  ;;  %v746_v2 = vrot.slane %v745_v44, 2  ;;  %v655_v16 = vrot.slane %v654_v3, 2  ;;  %v854_v27 = vunpack.c.l.b16 %v782_v9  ;;  %v774_v5 = vpack.c.bf16 %v574_v20, %v574_v20 }
  0xca   : > { %v387_v1 = vpop.permute.xlu0 %386  ;;  %v535_v63 = vmul.f32 %v1173_v41, %v443_v51  ;;  %v741_v30 = vrot.slane %v740_v10, 1  ;;  %v689_v32 = vadd.f32 %v688_v61, %v687_v4  ;;  %v705_v31 = vadd.f32 %v704_v17, %v703_v0 }
  0xcb   : > { %v527_v8 = vmul.f32 %v1157_v52, %v387_v1  ;;  %v747_v18 = vadd.f32 %v746_v2, %v745_v44  ;;  %v656_v37 = vadd.f32 %v655_v16, %v654_v3  ;;  %v581_v41 = vadd.f32 %v580_v23, %v579_v7  ;;  %937 = vmatpush.bf16.msra.mxu0 %v1127_v55 }
  0xcc   : > { %v694_v11 = vsel %vm546_vm0, %v535_v63, 0.0  ;;  %v846_v45 = vunpack.c.l.b16 %v774_v5  ;;  %v742_v51 = vadd.f32 %v741_v30, %v740_v10  ;;  %v690_v52 = vrot.slane %v689_v32, 2  ;;  %1210 = vmatpush.bf16.msra.mxu1 %v1127_v55 }
  0xcd   : > { %v638_v12 = vsel %vm546_vm0, %v527_v8, 0.0  ;;  %v695_v24 = vrot.slane %v694_v11, 4  ;;  %v748_v36 = vrot.slane %v747_v18, 1  ;;  %v1145_v56 = vunpack.c.h.bf16 %v1520_v34 }
  0xce   : > { %v639_v21 = vrot.slane %v638_v12, 4  ;;  %v1192_v57 = vunpack.c.l.bf16 %v1542_v39  ;;  %v657_v1 = vrot.slane %v656_v37, 1  ;;  %v1552_v63 = vsel %vm879_vm3, %v854_v27, %v890_v26 }
  0xcf   : > { %v696_v42 = vadd.f32 %v695_v24, %v694_v11  ;;  %v749_v58 = vadd.f32 %v748_v36, %v747_v18  ;;  %v775_v0 = vpack.c.bf16 %v581_v41, %v581_v41  ;;  %v706_v2 = vrot.slane %v705_v31, 1 }
  0xd0   : > { %v640_v28 = vadd.f32 %v639_v21, %v638_v12  ;;  %v1556_v40 = vsel %vm879_vm3, %v846_v45, %v1513_v50  ;;  %v798_v20 = vpack.c.bf16 %v742_v51, %v742_v51  ;;  %v691_v10 = vadd.f32 %v690_v52, %v689_v32 }
  0xd1   : > { %v394_v25 = vpop.permute.xlu1 %393  ;;  %v697_v3 = vrot.slane %v696_v42, 2  ;;  %v799_v12 = vpack.c.bf16 %v749_v58, %v749_v58  ;;  %v1193_v50 = vunpack.c.h.bf16 %v1542_v39  ;;  %v1561_v26 = vadd.f32 %v706_v2, %v705_v31 }
  0xd2   : > { %v338_v29 = vpop.permute.xlu0 %337  ;;  %v528_v33 = vmul.f32 %v1160_v13, %v394_v25  ;;  %v641_v38 = vrot.slane %v640_v28, 2  ;;  %v658_v13 = vadd.f32 %v657_v1, %v656_v37  ;;  %v692_v27 = vrot.slane %v691_v10, 1 }
  0xd3   : > { %v520_v35 = vmul.f32 %v1144_v14, %v338_v29  ;;  %v698_v18 = vadd.f32 %v697_v3, %v696_v42  ;;  %v847_v29 = vunpack.c.l.b16 %v775_v0  ;;  %v1564_v30 = vunpack.c.l.b16 %v798_v20 }
  0xd4   : > { %v645_v43 = vsel %vm546_vm0, %v528_v33, 0.0  ;;  %v642_v46 = vadd.f32 %v641_v38, %v640_v28  ;;  %v1177_v28 = vunpack.c.h.bf16 %v1478_v53  ;;  %v786_v36 = vpack.c.bf16 %v658_v13, %v658_v13 }
  0xd5   : > { %v589_v44 = vsel %vm546_vm0, %v520_v35, 0.0  ;;  %v646_v47 = vrot.slane %v645_v43, 4  ;;  %v1566_v35 = vunpack.c.l.b16 %v799_v12  ;;  %v699_v55 = vrot.slane %v698_v18, 1 }
  0xd6   : > { %v590_v49 = vrot.slane %v589_v44, 4  ;;  %v643_v34 = vrot.slane %v642_v46, 1 }
  0xd7   : > { %v647_v59 = vadd.f32 %v646_v47, %v645_v43  ;;  %v700_v58 = vadd.f32 %v699_v55, %v698_v18 }
  0xd8   : > { %v591_v62 = vadd.f32 %v590_v49, %v589_v44  ;;  %v644_v23 = vadd.f32 %v643_v34, %v642_v46  ;;  %v693_v44 = vadd.f32 %v692_v27, %v691_v10 }
  0xd9   : > { %v345_v4 = vpop.permute.xlu1 %344  ;;  %v648_v7 = vrot.slane %v647_v59, 2 }
  0xda   : > { %v592_v8 = vrot.slane %v591_v62, 2  ;;  %v506_v9 = vpop.permute.xlu0 %505  ;;  %v521_v11 = vmul.f32 %v1145_v56, %v345_v4  ;;  %v784_v41 = vpack.c.bf16 %v644_v23, %v644_v23  ;;  %v791_v4 = vpack.c.bf16 %v693_v44, %v693_v44 }
  0xdb   : > { %v544_v61 = vmul.f32 %v1192_v57, %v506_v9  ;;  %v649_v14 = vadd.f32 %v648_v7, %v647_v59 }
  0xdc   : > { %v593_v17 = vadd.f32 %v592_v8, %v591_v62  ;;  %v596_v16 = vsel %vm546_vm0, %v521_v11, 0.0  ;;  %v856_v1 = vunpack.c.l.b16 %v784_v41  ;;  %v882_v8 = vsel %vm881_vm4, %v847_v29, %v1556_v40 }
  0xdd   : > { %v757_v21 = vsel %vm546_vm0, %v544_v61, 0.0  ;;  %v650_v24 = vrot.slane %v649_v14, 1  ;;  %v597_v54 = vrot.slane %v596_v16, 4  ;;  %v892_v11 = vsel %vm881_vm4, %v1504_v15, %v1552_v63 }
  0xde   : > { %v594_v25 = vrot.slane %v593_v17, 1  ;;  %v758_v5 = vrot.slane %v757_v21, 4  ;;  %v792_v61 = vpack.c.bf16 %v700_v58, %v700_v58  ;;  %v884_v23 = vsel %vm883_vm5, %v1516_v60, %v882_v8 }
  0xdf   : > { %v651_v32 = vadd.f32 %v650_v24, %v649_v14  ;;  %v598_v33 = vadd.f32 %v597_v54, %v596_v16  ;;  %v893_v14 = vsel %vm883_vm5, %v856_v1, %v892_v11  ;;  %v800_v24 = vpack.c.bf16 %v1530_v22, %v1530_v22 }
  0xe0   : > { %v595_v37 = vadd.f32 %v594_v25, %v593_v17  ;;  %v759_v38 = vadd.f32 %v758_v5, %v757_v21  ;;  %v858_v17 = vunpack.c.l.b16 %v786_v36  ;;  %v863_v15 = vunpack.c.l.b16 %v791_v4 }
  0xe1   : > { %v513_v39 = vpop.permute.xlu1 %512  ;;  %v599_v42 = vrot.slane %v598_v33, 2  ;;  %v785_v45 = vpack.c.bf16 %v651_v32, %v651_v32  ;;  %v864_v54 = vunpack.c.l.b16 %v792_v61  ;;  %v793_v29 = vpack.c.bf16 %v1561_v26, %v1561_v26 }
  0xe2   : > { %v545_v31 = vmul.f32 %v1193_v50, %v513_v39  ;;  %v457_v43 = vpop.permute.xlu0 %456  ;;  %v760_v46 = vrot.slane %v759_v38, 2  ;;  %v777_v51 = vpack.c.bf16 %v595_v37, %v595_v37  ;;  %v905_v60 = vsel %vm879_vm3, %v1564_v30, %v1534_v19 }
  0xe3   : > { %v537_v53 = vmul.f32 %v1177_v28, %v457_v43  ;;  %v600_v47 = vadd.f32 %v599_v42, %v598_v33  ;;  %v857_v0 = vunpack.c.l.b16 %v785_v45  ;;  %v898_v37 = vsel %vm879_vm3, %v1489_v48, %v1524_v6 }
  0xe4   : > { %v764_v49 = vsel %vm546_vm0, %v545_v31, 0.0  ;;  %v761_v52 = vadd.f32 %v760_v46, %v759_v38  ;;  %v849_v9 = vunpack.c.l.b16 %v777_v51  ;;  %v906_v38 = vsel %vm881_vm4, %v1566_v35, %v905_v60  ;;  %v1255_v46 = vld [vmem:[%s1660_s3] ss:$0 sm:$0xff] }
  0xe5   : > { %v765_v56 = vrot.slane %v764_v49, 4  ;;  %v708_v57 = vsel %vm546_vm0, %v537_v53, 0.0  ;;  %v601_v59 = vrot.slane %v600_v47, 1  ;;  %v894_v16 = vsel %vm885_vm6, %v857_v0, %v893_v14 }
  0xe6   : > { %v709_v62 = vrot.slane %v708_v57, 4  ;;  %v762_v2 = vrot.slane %v761_v52, 1  ;;  %v886_v25 = vsel %vm885_vm6, %v849_v9, %v884_v23  ;;  %v895_v28 = vsel %vm887_vm7, %v858_v17, %v894_v16 }
  0xe7   : > { %v766_v3 = vadd.f32 %v765_v56, %v764_v49  ;;  %v602_v34 = vadd.f32 %v601_v59, %v600_v47  ;;  %v872_v39 = vunpack.c.l.b16 %v800_v24  ;;  %v899_v26 = vsel %vm881_vm4, %v863_v15, %v898_v37 }
  0xe8   : > { %v710_v7 = vadd.f32 %v709_v62, %v708_v57  ;;  %v763_v20 = vadd.f32 %v762_v2, %v761_v52  ;;  %v900_v19 = vsel %vm883_vm5, %v864_v54, %v899_v26  ;;  %v865_v30 = vunpack.c.l.b16 %v793_v29 }
  0xe9   : > { %v767_v10 = vrot.slane %v766_v3, 2  ;;  %v778_v12 = vpack.c.bf16 %v602_v34, %v602_v34  ;;  %v907_v31 = vsel %vm883_vm5, %v872_v39, %v906_v38 }
  0xea   : > { %v711_v13 = vrot.slane %v710_v7, 2  ;;  %v801_v50 = vpack.c.bf16 %v763_v20, %v763_v20  ;;  %v901_v48 = vsel %vm885_vm6, %v865_v30, %v900_v19 }
  0xeb   : > { %v768_v18 = vadd.f32 %v767_v10, %v766_v3  ;;  %v850_v21 = vunpack.c.l.b16 %v778_v12 }
  0xec   : > { %v712_v40 = vadd.f32 %v711_v13, %v710_v7  ;;  %v873_v22 = vunpack.c.l.b16 %v801_v50 }
  0xed   : > { %v769_v63 = vrot.slane %v768_v18, 1  ;;  %v888_v5 = vsel %vm887_vm7, %v850_v21, %v886_v25 }
  0xee   : > { %v713_v27 = vrot.slane %v712_v40, 1  ;;  %v910_v33 = vpack.c.b16 %v895_v28, %v888_v5  ;;  %v908_v44 = vsel %vm885_vm6, %v873_v22, %v907_v31 }
  0xef   : > { %v770_v32 = vadd.f32 %v769_v63, %v768_v18 }
  0xf0   : > { %v714_v36 = vadd.f32 %v713_v27, %v712_v40  ;;  %1120 = vmatmul.msk.bf16.vlgmr.msra.gmra.mxu0 %vm546_vm0, %v910_v33 }
  0xf1   : > { %v802_v55 = vpack.c.bf16 %v770_v32, %v770_v32 }
  0xf2   : > { %v794_v41 = vpack.c.bf16 %v714_v36, %v714_v36 }
  0xf3   : > { %v874_v42 = vunpack.c.l.b16 %v802_v55 }
  0xf4   : > { %v866_v43 = vunpack.c.l.b16 %v794_v41 }
  0xf5   : > { %v909_v6 = vsel %vm887_vm7, %v874_v42, %v908_v44 }
  0xf6   : > { %v902_v35 = vsel %vm887_vm7, %v866_v43, %v901_v48 }
  0xf7   : > { %v911_v45 = vpack.c.b16 %v909_v6, %v902_v35 }
  0xf9   : > { %1121 = vmatmul.msk.bf16.vlgmr.msra.gmra.mxu1 %vm546_vm0, %v911_v45 }
 0x16d   : > { %v939_v53 = vpop.f32.mrf.mxu0 }
 0x16e   : > { %v940_v47 = vadd.f32 %v1255_v46, %v939_v53 }
 0x170   : > { %v949_v49 = vmul.f32 %v940_v47, %v940_v47 }
 0x172   : > { %953 = vadd.xlane.f32.xlu2 %v949_v49 }
 0x175   : > { %v941_v51 = vpop.f32.mrf.mxu0 }
 0x176   : > { %v944_v52 = vpop.f32.mrf.mxu1  ;;  %v942_v56 = vadd.f32 %v1255_v46, %v941_v51 }
 0x177   : > { %v945_v57 = vadd.f32 %v1255_v46, %v944_v52 }
 0x178   : > { %v950_v1 = vmul.f32 %v942_v56, %v942_v56 }
 0x179   : > { %v951_v58 = vmul.f32 %v945_v57, %v945_v57 }
 0x17a   : > { %955 = vadd.xlane.f32.xlu0 %v950_v1 }
 0x17b   : > { %957 = vadd.xlane.f32.xlu1 %v951_v58 }
 0x17e   : > { %v946_v59 = vpop.f32.mrf.mxu1 }
 0x17f   : > { %v1606_v62 = vadd.f32 %v1255_v46, %v946_v59 }
 0x181   : > { %v952_v0 = vmul.f32 %v1606_v62, %v1606_v62 }
 0x183   : > { %959 = vadd.xlane.f32.xlu2 %v952_v0 }
 0x1e5   : > { %v954_v2 = vpop.xlane.xlu2 %953 }
 0x1e6   : > { %v961_v3 = vadd.f32 1e-12, %v954_v2 }
 0x1e8   : > { %1256 = vrsqrt.f32 %v961_v3  ;;  %vm971_vm9 = vweird.f32 %v961_v3 }
 0x1ed   : > { %v956_v34 = vpop.xlane.xlu0 %955 }
 0x1ee   : > { %v958_v4 = vpop.xlane.xlu1 %957  ;;  %v1257_v7 = vpop.eup %1256  ;;  %v962_v9 = vadd.f32 1e-12, %v956_v34 }
 0x1ef   : > { %v963_v8 = vadd.f32 1e-12, %v958_v4  ;;  %v966_v20 = vmul.f32 %v1257_v7, %v961_v3  ;;  %vm972_vm8 = vweird.f32 %v1257_v7 }
 0x1f0   : > { %vm973_vm10 = vmor %vm971_vm9, %vm972_vm8  ;;  %vm981_vm15 = vweird.f32 %v962_v9 }
 0x1f1   : > { %1258 = vrsqrt.f32 %v963_v8  ;;  %v967_v10 = vmul.f32 %v1257_v7, %v966_v20  ;;  %vm991_vm13 = vweird.f32 %v963_v8 }
 0x1f2   : > { %1260 = vrsqrt.f32 %v962_v9 }
 0x1f3   : > { %v968_v11 = vmul.f32 0.5, %v967_v10 }
 0x1f5   : > { %v969_v61 = vsub.f32 1.5, %v968_v11 }
 0x1f6   : > { %v960_v12 = vpop.xlane.xlu2 %959 }
 0x1f7   : > { %v1259_v13 = vpop.eup %1258  ;;  %v964_v14 = vadd.f32 1e-12, %v960_v12  ;;  %v970_v18 = vmul.f32 %v1257_v7, %v969_v61 }
 0x1f8   : > { %v1261_v17 = vpop.eup %1260  ;;  %v986_v16 = vmul.f32 %v1259_v13, %v963_v8  ;;  %vm992_vm11 = vweird.f32 %v1259_v13 }
 0x1f9   : > { %v976_v21 = vmul.f32 %v1261_v17, %v962_v9  ;;  %1262 = vrsqrt.f32 %v964_v14  ;;  %v974_v50 = vsel %vm973_vm10, %v1257_v7, %v970_v18  ;;  %vm982_vm12 = vweird.f32 %v1261_v17  ;;  %vm993_vm14 = vmor %vm991_vm13, %vm992_vm11 }
 0x1fa   : > { %v987_v40 = vmul.f32 %v1259_v13, %v986_v16  ;;  %v1005_v23 = vmul.f32 %v974_v50, %v940_v47  ;;  %vm983_vm0 = vmor %vm981_vm15, %vm982_vm12  ;;  %vm1001_vm2 = vweird.f32 %v964_v14 }
 0x1fb   : > { %v977_v24 = vmul.f32 %v1261_v17, %v976_v21 }
 0x1fc   : > { %v988_v15 = vmul.f32 0.5, %v987_v40  ;;  %1009 = vst [vmem:[%s1613_s28] sm:$0xff] %v1005_v23 }
 0x1fd   : > { %v978_v63 = vmul.f32 0.5, %v977_v24 }
 0x1fe   : > { %v989_v25 = vsub.f32 1.5, %v988_v15 }
 0x1ff   : > { %v1263_v54 = vpop.eup %1262  ;;  %v979_v27 = vsub.f32 1.5, %v978_v63 }
 0x200   : > { %v990_v5 = vmul.f32 %v1259_v13, %v989_v25  ;;  %v996_v28 = vmul.f32 %v1263_v54, %v964_v14  ;;  %vm1002_vm1 = vweird.f32 %v1263_v54 }
 0x201   : > { %v980_v29 = vmul.f32 %v1261_v17, %v979_v27  ;;  %vm1003_vm3 = vmor %vm1001_vm2, %vm1002_vm1 }
 0x202   : > { %v994_v60 = vsel %vm993_vm14, %v1259_v13, %v990_v5  ;;  %v997_v32 = vmul.f32 %v1263_v54, %v996_v28 }
 0x203   : > { %v1007_v33 = vmul.f32 %v994_v60, %v945_v57  ;;  %v984_v22 = vsel %vm983_vm0, %v1261_v17, %v980_v29 }
 0x204   : > { %v1006_v36 = vmul.f32 %v984_v22, %v942_v56  ;;  %v998_v37 = vmul.f32 0.5, %v997_v32 }
 0x205   : > { %1011 = vst [vmem:[%s1613_s28 + $0x10] sm:$0xff] %v1007_v33 }
 0x206   : > { %1010 = vst [vmem:[%s1613_s28 + $0x8] sm:$0xff] %v1006_v36  ;;  %v999_v38 = vsub.f32 1.5, %v998_v37 }
 0x208   : > { %v1000_v39 = vmul.f32 %v1263_v54, %v999_v38 }
 0x20a   : > { %v1004_v55 = vsel %vm1003_vm3, %v1263_v54, %v1000_v39 }
 0x20b   : > { %v1008_v26 = vmul.f32 %v1004_v55, %v1606_v62 }
 0x20d   : > { %1012 = vst [vmem:[%s1613_s28 + $0x18] sm:$0xff] %v1008_v26 }
 0x20e   : > { %1291 = shalt.err (!%p1288_p4)
}
 0x20f   : > { %s1328_s20 = smov 128   ;;  %s1329_s22 = smov 8  }
 0x210   : > { %1211 = dma.vmem_to_hbm [thread:$0]  (%p1393_p5), %s1027_s7, 512, %s1029_s8, %s1014_s6, %s1328_s20, %s1328_s20, %s1329_s22  }
 0x211 PF: > { %p1217_p7 = scmp.ge.s32.totalorder %s1326_s18, 2  ;;  %s1043_s23 = sand.u32 1, %s1314_s15  }
 0x212   : > { %s1044_s27 = scalar_lea.sflag [#allocation3], %s1043_s23 }
 0x213   : > { %p1214_p8 = pnand %p1217_p7, %p1397_p6 }
 0x215   : > { %p1215_p9 = pneg %p1214_p8 }
 0x217   : > { %1309 = dma.done.wait (%p1215_p9), %s1044_s27, 512  }
 0x218   : > { %1311 = vsyncadd (%p1215_p9), %s1044_s27, 4294966784  ;;  %p14_p10 = scmp.ge.s32.totalorder %s1380_s21, 4   ;;  %s1664_s15 = smov %s1318_s16 }
 0x219   : > { %s1665_s16 = smov %s1322_s17  ;;  %s1666_s17 = smov %s1391_s24 }
 0x21a   : > { %s1667_s18 = smov %s1380_s21  ;;  %16 = sbr.rel (!%p14_p10) target bundleno = 3 (0x3), region = 74 }
 0x21f   :  { %1050 = vsyncpa [#allocation3], 1 }
 0x220   :  { %1052 = vsyncpa [#allocation3 + $0x1], 1 }

</bundles_post_ra>
